<compile_context>
chip_gen: v7x
topology: tpu7x:2x2x1
jax: 0.10.0
libtpu: 0.0.40
codegen_flags: <defaults>
</compile_context>

<pallas_src>
import functools

import jax
import jax.numpy as jnp
from jax.experimental import pallas as pl
from jax.experimental.pallas import tpu as pltpu


def _round_up(x, m):
    return (x + m - 1) // m * m


def _pad_gate_cols(w, H, Hp):
    """Pad the 4-gate last dim (4H) to (4Hp) gate-block-wise (PyTorch i,f,g,o order)."""
    rows = w.shape[0]
    w4 = w.reshape(rows, 4, H)
    w4 = jnp.pad(w4, ((0, 0), (0, 0), (0, Hp - H)))
    return w4.reshape(rows, 4 * Hp)


def _sigmoid(x):
    # logistic(x) == 0.5 * tanh(0.5 x) + 0.5 : one EUP op instead of exp+recip.
    return 0.5 * jnp.tanh(0.5 * x) + 0.5


def _lstm_kernel(x_ref, wih_ref, whh_ref, bias_ref, wlin_ref, blin_ref,
                 out_ref, gx_ref, h_ref, c_ref, *,
                 hidden_pad, in_size, t_chunk, batch_block, seq_len,
                 needs_mask):
    """One grid step = one batch block x one chunk of t_chunk LSTM time steps."""
    Hp = hidden_pad
    TB = t_chunk * batch_block
    tc = pl.program_id(1)                 # time-chunk index (sequential)

    # Initialize carried state (h, c) at the first chunk of each batch block.
    @pl.when(tc == 0)
    def _():
        h_ref[...] = jnp.zeros_like(h_ref)
        c_ref[...] = jnp.zeros_like(c_ref)

    # ---- x-side projection for the whole chunk (no sequential dependence):
    #      gx = x @ W_ih^T + (b_ih + b_hh), written once into VMEM scratch. ----
    x = x_ref[...].astype(jnp.float32)                      # (TB, I)
    bias = bias_ref[...]                                    # (1, 4Hp)
    if in_size <= 4:
        # Tiny I (the common I=1 case): pure VPU broadcast-multiply-accumulate.
        w = wih_ref[...].astype(jnp.float32)                # (I, 4Hp)
        gx = jnp.broadcast_to(bias, (TB, 4 * Hp))
        for ii in range(in_size):
            gx = gx + x[:, ii:ii + 1] * w[ii:ii + 1, :]
    else:
        gx = jnp.dot(x.astype(wih_ref.dtype), wih_ref[...],
                     preferred_element_type=jnp.float32) + bias
    gx_ref[...] = gx

    h = h_ref[...]
    c = c_ref[...]
    base_t = tc * t_chunk

    # Statically-unrolled recurrence: only h @ W_hh^T stays in the loop.
    # whh_ref[...] is loop-invariant across the unrolled chunk, so the MXU RHS
    # is staged once per chunk rather than re-pushed every step.
    for s in range(t_chunk):
        gx_s = gx_ref[s * batch_block:(s + 1) * batch_block, :]    # (Bblk, 4Hp)
        gates = gx_s + jnp.dot(h.astype(whh_ref.dtype), whh_ref[...],
                               preferred_element_type=jnp.float32)

        i_g = _sigmoid(gates[:, 0 * Hp:1 * Hp])
        f_g = _sigmoid(gates[:, 1 * Hp:2 * Hp])
        g_g = jnp.tanh(gates[:, 2 * Hp:3 * Hp])
        o_g = _sigmoid(gates[:, 3 * Hp:4 * Hp])

        c_new = f_g * c + i_g * g_g
        h_new = o_g * jnp.tanh(c_new)

        if needs_mask:
            # Only taken when S % t_chunk != 0: ignore padded time steps.
            keep = (base_t + s) < seq_len
            h = jnp.where(keep, h_new, h)
            c = jnp.where(keep, c_new, c)
        else:
            h, c = h_new, c_new

    h_ref[...] = h
    c_ref[...] = c

    # Final Linear on h_T (== lstm_out[:, -1, :]), once per batch block.
    # Output lanes are padded to 128 -> unmasked, lane-dense store.
    @pl.when(tc == pl.num_programs(1) - 1)
    def _():
        pred = jnp.dot(h.astype(wlin_ref.dtype), wlin_ref[...],
                       preferred_element_type=jnp.float32) + blin_ref[...]
        out_ref[...] = pred.astype(out_ref.dtype)


def lstm_forward(x_bsi, params, *, t_chunk=None, batch_block=None,
                 weights_dtype=jnp.float32):
    """x_bsi: (B, S, I) float32, batch_first like the PyTorch module."""
    w_ih, w_hh, b_ih, b_hh, w_lin, b_lin = (
        params["w_ih"], params["w_hh"], params["b_ih"],
        params["b_hh"], params["w_lin"], params["b_lin"])

    B, S, I = x_bsi.shape
    H = w_hh.shape[1]
    O = w_lin.shape[0]
    Hp = _round_up(H, 128)                 # lane-align each gate slice
    Op = _round_up(O, 128)                 # lane-dense epilogue store

    # Batch rows fed to the MXU per recurrence step: >=32 when the batch
    # allows it (M=8 uses <7% of the MXU), capped at 32 so large batches
    # still split into >=2 independent blocks for v7x core-parallel sharding.
    if batch_block is None:
        batch_block = min(_round_up(B, 8), 32)
    if weights_dtype == jnp.bfloat16:
        batch_block = _round_up(batch_block, 16)   # bf16 sublane tile is (16,128)
    if t_chunk is None:
        t_chunk = max(1, min(S, 32))       # amortize per-grid-step overhead

    S_pad = _round_up(S, t_chunk)
    Bp = _round_up(B, batch_block)
    n_b = Bp // batch_block
    n_t = S_pad // t_chunk

    # ---- padded, right-multiply-form weights (zeros in padded rows/cols) ----
    wih_p = _pad_gate_cols(w_ih.T, H, Hp)                            # (I, 4Hp)
    whh_p = _pad_gate_cols(w_hh.T, H, Hp)                            # (H, 4Hp)
    whh_p = jnp.pad(whh_p, ((0, Hp - H), (0, 0)))                    # (Hp, 4Hp)
    bias_p = _pad_gate_cols((b_ih + b_hh).reshape(1, 4 * H), H, Hp)  # (1, 4Hp)
    bias_p = bias_p.astype(jnp.float32)
    wlin_p = jnp.pad(w_lin.T, ((0, Hp - H), (0, Op - O)))            # (Hp, Op)
    blin_p = jnp.pad(b_lin.reshape(1, O),
                     ((0, 0), (0, Op - O))).astype(jnp.float32)      # (1, Op)

    # Optional bf16 storage for the MXU weight operands only (f32 accumulation
    # and f32 element-wise math are kept -- mandatory on v5e).
    wih_p = wih_p.astype(weights_dtype)
    whh_p = whh_p.astype(weights_dtype)
    wlin_p = wlin_p.astype(weights_dtype)

    # ---- raw x, rearranged so each (batch block, time chunk) is one
    #      contiguous (t_chunk*batch_block, I) slab (x is streamed; the gate
    #      projection happens inside the kernel). ----
    x_p = jnp.pad(x_bsi.astype(jnp.float32),
                  ((0, Bp - B), (0, S_pad - S), (0, 0)))             # (Bp, S_pad, I)
    x_arr = x_p.reshape(n_b, batch_block, S_pad, I)
    x_arr = x_arr.transpose(0, 2, 1, 3).reshape(n_b, S_pad * batch_block, I)

    kernel = functools.partial(
        _lstm_kernel, hidden_pad=Hp, in_size=I, t_chunk=t_chunk,
        batch_block=batch_block, seq_len=S, needs_mask=(S_pad != S))

    # Generation-aware VMEM budget (v7x: 64 MiB physical; v5e/v6e: 128 MiB).
    w_bytes = jnp.dtype(weights_dtype).itemsize
    vmem_need = (
        2 * t_chunk * batch_block * I * 4            # x chunk (double-buffered)
        + 2 * I * 4 * Hp * w_bytes                   # W_ih^T
        + 2 * Hp * 4 * Hp * w_bytes                  # W_hh^T (resident)
        + 2 * 4 * Hp * 4                             # bias
        + 2 * Hp * Op * w_bytes + 2 * Op * 4         # W_lin^T, b_lin
        + 2 * batch_block * Op * 4                   # output block
        + t_chunk * batch_block * 4 * Hp * 4         # gx scratch
        + 2 * batch_block * Hp * 4)                  # h, c scratch
    try:
        vmem_cap = int(pltpu.get_tpu_info().vmem_capacity_bytes)
    except Exception:
        vmem_cap = 64 * 1024 * 1024                  # conservative (v7x) fallback
    vmem_limit = int(min(max(2 * vmem_need, 16 * 1024 * 1024),
                         (vmem_cap * 3) // 4))

    # NOTE: for large H, the resident W_hh^T / W_lin^T / bias specs can be
    # single-buffered (pipeline_mode=pl.Buffered(1)) to halve their VMEM
    # footprint; at H=100 the second buffer is noise, so defaults are kept.

    # Batch blocks are fully independent -> let multi-TensorCore chips (v7x)
    # shard them; the time axis carries h/c state -> sequential.
    dim0 = pltpu.CORE_PARALLEL if n_b >= 2 else pltpu.PARALLEL

    out = pl.pallas_call(
        kernel,
        out_shape=jax.ShapeDtypeStruct((Bp, Op), jnp.float32),
        grid_spec=pltpu.PrefetchScalarGridSpec(
            num_scalar_prefetch=0,
            grid=(n_b, n_t),                                        # (batch, time)
            in_specs=[
                pl.BlockSpec((None, t_chunk * batch_block, I),
                             lambda b, t: (b, t, 0)),               # raw x chunk
                pl.BlockSpec((I, 4 * Hp), lambda b, t: (0, 0)),     # W_ih^T
                pl.BlockSpec((Hp, 4 * Hp), lambda b, t: (0, 0)),    # W_hh^T
                pl.BlockSpec((1, 4 * Hp), lambda b, t: (0, 0)),     # bias
                pl.BlockSpec((Hp, Op), lambda b, t: (0, 0)),        # W_lin^T
                pl.BlockSpec((1, Op), lambda b, t: (0, 0)),         # b_lin
            ],
            out_specs=pl.BlockSpec((batch_block, Op), lambda b, t: (b, 0)),
            scratch_shapes=[
                pltpu.VMEM((t_chunk * batch_block, 4 * Hp), jnp.float32),  # gx
                pltpu.VMEM((batch_block, Hp), jnp.float32),                # h
                pltpu.VMEM((batch_block, Hp), jnp.float32),                # c
            ],
        ),
        compiler_params=pltpu.CompilerParams(
            dimension_semantics=(dim0, pltpu.ARBITRARY),
            vmem_limit_bytes=vmem_limit),
    )(x_arr, wih_p, whh_p, bias_p, wlin_p, blin_p)

    return out[:B, :O]


def lstm_forward_ref(x_bsi, params):
    """Pure-JAX reference matching torch.nn.LSTM(batch_first=True) + Linear."""
    w_ih, w_hh, b_ih, b_hh, w_lin, b_lin = (
        params["w_ih"], params["w_hh"], params["b_ih"],
        params["b_hh"], params["w_lin"], params["b_lin"])
    B, S, I = x_bsi.shape
    H = w_hh.shape[1]

    def step(carry, x_t):
        h, c = carry
        gates = x_t @ w_ih.T + h @ w_hh.T + b_ih + b_hh
        i = jax.nn.sigmoid(gates[:, 0 * H:1 * H])
        f = jax.nn.sigmoid(gates[:, 1 * H:2 * H])
        g = jnp.tanh(gates[:, 2 * H:3 * H])
        o = jax.nn.sigmoid(gates[:, 3 * H:4 * H])
        c = f * c + i * g
        h = o * jnp.tanh(c)
        return (h, c), None

    h0 = jnp.zeros((B, H), jnp.float32)
    c0 = jnp.zeros((B, H), jnp.float32)
    (h_last, _), _ = jax.lax.scan(step, (h0, c0), jnp.transpose(x_bsi, (1, 0, 2)))
    return h_last @ w_lin.T + b_lin


def init_params(key, input_size=1, hidden_size=100, output_size=2):
    # Same shapes/init range as nn.LSTM / nn.Linear (U(-1/sqrt(H), 1/sqrt(H))).
    # TODO(synk): the PyTorch module's console logger has no kernel equivalent.
    k = 1.0 / jnp.sqrt(jnp.float32(hidden_size))
    keys = jax.random.split(key, 6)
    u = lambda kk, shape: jax.random.uniform(kk, shape, jnp.float32, -k, k)
    return {
        "w_ih": u(keys[0], (4 * hidden_size, input_size)),
        "w_hh": u(keys[1], (4 * hidden_size, hidden_size)),
        "b_ih": u(keys[2], (4 * hidden_size,)),
        "b_hh": u(keys[3], (4 * hidden_size,)),
        "w_lin": u(keys[4], (output_size, hidden_size)),
        "b_lin": u(keys[5], (output_size,)),
    }


if __name__ == "__main__":
    key = jax.random.PRNGKey(0)
    kx, kp = jax.random.split(key)

    batch, seq_len, input_size = 4, 8, 1
    hidden_size, output_size = 100, 2

    x = jax.random.normal(kx, (batch, seq_len, input_size), jnp.float32)
    params = init_params(kp, input_size, hidden_size, output_size)

    out = lstm_forward(x, params)
    out = jax.block_until_ready(out)

    ref = lstm_forward_ref(x, params)
    assert out.shape == (batch, output_size)
    assert jnp.allclose(out, ref, rtol=1e-4, atol=1e-4), "mismatch vs reference"

    print("KERNEL_OK")
</pallas_src>

<mosaic_0001>
module attributes {stable_mosaic.version = 11 : i64} {
  func.func @_lstm_kernel(%arg0: i32, %arg1: i32, %arg2: memref<1x64x1xf32, #tpu.memory_space<vmem>>, %arg3: memref<1x512xf32, #tpu.memory_space<vmem>>, %arg4: memref<128x512xf32, #tpu.memory_space<vmem>>, %arg5: memref<1x512xf32, #tpu.memory_space<vmem>>, %arg6: memref<128x128xf32, #tpu.memory_space<vmem>>, %arg7: memref<1x128xf32, #tpu.memory_space<vmem>>, %arg8: memref<8x128xf32, #tpu.memory_space<vmem>>, %arg9: memref<64x512xf32, #tpu.memory_space<vmem>>, %arg10: memref<8x128xf32, #tpu.memory_space<vmem>>, %arg11: memref<8x128xf32, #tpu.memory_space<vmem>>) attributes {dimension_semantics = [#tpu.dimension_semantics<parallel>, #tpu.dimension_semantics<arbitrary>], iteration_bounds = array<i64: 1, 1>, scalar_prefetch = 0 : i64, scratch_operands = 3 : i64, tpu.core_type = #tpu.core_type<tc>, window_params = [{transform_indices = @transform_0, window_bounds = array<i64: 1, 64, 1>}, {pipeline_mode = #tpu.pipeline_mode<synchronous>, transform_indices = @transform_1, window_bounds = array<i64: 1, 512>}, {pipeline_mode = #tpu.pipeline_mode<synchronous>, transform_indices = @transform_2, window_bounds = array<i64: 128, 512>}, {pipeline_mode = #tpu.pipeline_mode<synchronous>, transform_indices = @transform_3, window_bounds = array<i64: 1, 512>}, {pipeline_mode = #tpu.pipeline_mode<synchronous>, transform_indices = @transform_4, window_bounds = array<i64: 128, 128>}, {pipeline_mode = #tpu.pipeline_mode<synchronous>, transform_indices = @transform_5, window_bounds = array<i64: 1, 128>}, {transform_indices = @transform_6, window_bounds = array<i64: 8, 128>}]} {
    %c0_i32 = arith.constant 0 : i32
    %0 = arith.cmpi eq, %arg1, %c0_i32 : i32
    %1 = arith.extui %0 : i1 to i32
    %c0_i32_0 = arith.constant 0 : i32
    %2 = arith.cmpi ne, %1, %c0_i32_0 : i32
    scf.if %2 {
      %cst_123 = arith.constant 0.000000e+00 : f32
      %301 = vector.broadcast %cst_123 : f32 to vector<8x128xf32>
      %c0_124 = arith.constant 0 : index
      %c0_125 = arith.constant 0 : index
      %302 = vector.load %arg10[%c0_124, %c0_125] : memref<8x128xf32, #tpu.memory_space<vmem>>, vector<8x128xf32>
      tpu.vector_store %arg10[%c0_124, %c0_125], %301 {strides = array<i32>} : memref<8x128xf32, #tpu.memory_space<vmem>>, vector<8x128xf32>,
      %cst_126 = arith.constant 0.000000e+00 : f32
      %303 = vector.broadcast %cst_126 : f32 to vector<8x128xf32>
      %c0_127 = arith.constant 0 : index
      %c0_128 = arith.constant 0 : index
      %304 = vector.load %arg11[%c0_127, %c0_128] : memref<8x128xf32, #tpu.memory_space<vmem>>, vector<8x128xf32>
      tpu.vector_store %arg11[%c0_127, %c0_128], %303 {strides = array<i32>} : memref<8x128xf32, #tpu.memory_space<vmem>>, vector<8x128xf32>,
    } else {
    }
    %c0 = arith.constant 0 : index
    %c0_1 = arith.constant 0 : index
    %c0_2 = arith.constant 0 : index
    %3 = vector.load %arg2[%c0, %c0_1, %c0_2] : memref<1x64x1xf32, #tpu.memory_space<vmem>>, vector<1x64x1xf32>
    %4 = vector.shape_cast %3 : vector<1x64x1xf32> to vector<64x1xf32>
    %c0_3 = arith.constant 0 : index
    %c0_4 = arith.constant 0 : index
    %5 = vector.load %arg5[%c0_3, %c0_4] : memref<1x512xf32, #tpu.memory_space<vmem>>, vector<1x512xf32>
    %c0_5 = arith.constant 0 : index
    %c0_6 = arith.constant 0 : index
    %6 = vector.load %arg3[%c0_5, %c0_6] : memref<1x512xf32, #tpu.memory_space<vmem>>, vector<1x512xf32>
    %7 = vector.shape_cast %5 : vector<1x512xf32> to vector<1x512xf32>
    %8 = vector.broadcast %7 : vector<1x512xf32> to vector<64x512xf32>
    %9 = vector.broadcast %4 : vector<64x1xf32> to vector<64x512xf32>
    %10 = vector.broadcast %6 : vector<1x512xf32> to vector<64x512xf32>
    %11 = arith.mulf %9, %10 : vector<64x512xf32>
    %12 = arith.addf %8, %11 : vector<64x512xf32>
    %c0_7 = arith.constant 0 : index
    %c0_8 = arith.constant 0 : index
    %13 = vector.load %arg9[%c0_7, %c0_8] : memref<64x512xf32, #tpu.memory_space<vmem>>, vector<64x512xf32>
    tpu.vector_store %arg9[%c0_7, %c0_8], %12 {strides = array<i32>} : memref<64x512xf32, #tpu.memory_space<vmem>>, vector<64x512xf32>,
    %c0_9 = arith.constant 0 : index
    %c0_10 = arith.constant 0 : index
    %14 = vector.load %arg10[%c0_9, %c0_10] : memref<8x128xf32, #tpu.memory_space<vmem>>, vector<8x128xf32>
    %c0_11 = arith.constant 0 : index
    %c0_12 = arith.constant 0 : index
    %15 = vector.load %arg11[%c0_11, %c0_12] : memref<8x128xf32, #tpu.memory_space<vmem>>, vector<8x128xf32>
    %c0_13 = arith.constant 0 : index
    %c0_14 = arith.constant 0 : index
    %16 = vector.load %arg9[%c0_13, %c0_14] : memref<64x512xf32, #tpu.memory_space<vmem>>, vector<8x512xf32>
    %c0_15 = arith.constant 0 : index
    %c0_16 = arith.constant 0 : index
    %17 = vector.load %arg4[%c0_15, %c0_16] : memref<128x512xf32, #tpu.memory_space<vmem>>, vector<128x512xf32>
    %cst = arith.constant dense<0.000000e+00> : vector<8x512xf32>
    %18 = tpu.matmul %14, %17, %cst {dimension_numbers = #tpu.dot_dimension_numbers<[1], [0], [0], [1], [0, 0, 1, 1], [], []>} : vector<8x128xf32>, vector<128x512xf32>, vector<8x512xf32> -> vector<8x512xf32>
    %19 = arith.addf %16, %18 : vector<8x512xf32>
    %20 = vector.extract_strided_slice %19 {offsets = [0, 0], sizes = [8, 128], strides = [1, 1]} : vector<8x512xf32> to vector<8x128xf32>
    %cst_17 = arith.constant 5.000000e-01 : f32
    %21 = vector.broadcast %cst_17 : f32 to vector<8x128xf32>
    %22 = arith.mulf %21, %20 : vector<8x128xf32>
    %23 = math.tanh %22 : vector<8x128xf32>
    %cst_18 = arith.constant 5.000000e-01 : f32
    %24 = vector.broadcast %cst_18 : f32 to vector<8x128xf32>
    %25 = arith.mulf %24, %23 : vector<8x128xf32>
    %cst_19 = arith.constant 5.000000e-01 : f32
    %26 = vector.broadcast %cst_19 : f32 to vector<8x128xf32>
    %27 = arith.addf %25, %26 : vector<8x128xf32>
    %28 = vector.extract_strided_slice %19 {offsets = [0, 128], sizes = [8, 128], strides = [1, 1]} : vector<8x512xf32> to vector<8x128xf32>
    %cst_20 = arith.constant 5.000000e-01 : f32
    %29 = vector.broadcast %cst_20 : f32 to vector<8x128xf32>
    %30 = arith.mulf %29, %28 : vector<8x128xf32>
    %31 = math.tanh %30 : vector<8x128xf32>
    %cst_21 = arith.constant 5.000000e-01 : f32
    %32 = vector.broadcast %cst_21 : f32 to vector<8x128xf32>
    %33 = arith.mulf %32, %31 : vector<8x128xf32>
    %cst_22 = arith.constant 5.000000e-01 : f32
    %34 = vector.broadcast %cst_22 : f32 to vector<8x128xf32>
    %35 = arith.addf %33, %34 : vector<8x128xf32>
    %36 = vector.extract_strided_slice %19 {offsets = [0, 256], sizes = [8, 128], strides = [1, 1]} : vector<8x512xf32> to vector<8x128xf32>
    %37 = math.tanh %36 : vector<8x128xf32>
    %38 = vector.extract_strided_slice %19 {offsets = [0, 384], sizes = [8, 128], strides = [1, 1]} : vector<8x512xf32> to vector<8x128xf32>
    %cst_23 = arith.constant 5.000000e-01 : f32
    %39 = vector.broadcast %cst_23 : f32 to vector<8x128xf32>
    %40 = arith.mulf %39, %38 : vector<8x128xf32>
    %41 = math.tanh %40 : vector<8x128xf32>
    %cst_24 = arith.constant 5.000000e-01 : f32
    %42 = vector.broadcast %cst_24 : f32 to vector<8x128xf32>
    %43 = arith.mulf %42, %41 : vector<8x128xf32>
    %cst_25 = arith.constant 5.000000e-01 : f32
    %44 = vector.broadcast %cst_25 : f32 to vector<8x128xf32>
    %45 = arith.addf %43, %44 : vector<8x128xf32>
    %46 = arith.mulf %35, %15 : vector<8x128xf32>
    %47 = arith.mulf %27, %37 : vector<8x128xf32>
    %48 = arith.addf %46, %47 : vector<8x128xf32>
    %49 = math.tanh %48 : vector<8x128xf32>
    %50 = arith.mulf %45, %49 : vector<8x128xf32>
    %c8 = arith.constant 8 : index
    %c0_26 = arith.constant 0 : index
    %51 = vector.load %arg9[%c8, %c0_26] : memref<64x512xf32, #tpu.memory_space<vmem>>, vector<8x512xf32>
    %c0_27 = arith.constant 0 : index
    %c0_28 = arith.constant 0 : index
    %52 = vector.load %arg4[%c0_27, %c0_28] : memref<128x512xf32, #tpu.memory_space<vmem>>, vector<128x512xf32>
    %cst_29 = arith.constant dense<0.000000e+00> : vector<8x512xf32>
    %53 = tpu.matmul %50, %52, %cst_29 {dimension_numbers = #tpu.dot_dimension_numbers<[1], [0], [0], [1], [0, 0, 1, 1], [], []>} : vector<8x128xf32>, vector<128x512xf32>, vector<8x512xf32> -> vector<8x512xf32>
    %54 = arith.addf %51, %53 : vector<8x512xf32>
    %55 = vector.extract_strided_slice %54 {offsets = [0, 0], sizes = [8, 128], strides = [1, 1]} : vector<8x512xf32> to vector<8x128xf32>
    %cst_30 = arith.constant 5.000000e-01 : f32
    %56 = vector.broadcast %cst_30 : f32 to vector<8x128xf32>
    %57 = arith.mulf %56, %55 : vector<8x128xf32>
    %58 = math.tanh %57 : vector<8x128xf32>
    %cst_31 = arith.constant 5.000000e-01 : f32
    %59 = vector.broadcast %cst_31 : f32 to vector<8x128xf32>
    %60 = arith.mulf %59, %58 : vector<8x128xf32>
    %cst_32 = arith.constant 5.000000e-01 : f32
    %61 = vector.broadcast %cst_32 : f32 to vector<8x128xf32>
    %62 = arith.addf %60, %61 : vector<8x128xf32>
    %63 = vector.extract_strided_slice %54 {offsets = [0, 128], sizes = [8, 128], strides = [1, 1]} : vector<8x512xf32> to vector<8x128xf32>
    %cst_33 = arith.constant 5.000000e-01 : f32
    %64 = vector.broadcast %cst_33 : f32 to vector<8x128xf32>
    %65 = arith.mulf %64, %63 : vector<8x128xf32>
    %66 = math.tanh %65 : vector<8x128xf32>
    %cst_34 = arith.constant 5.000000e-01 : f32
    %67 = vector.broadcast %cst_34 : f32 to vector<8x128xf32>
    %68 = arith.mulf %67, %66 : vector<8x128xf32>
    %cst_35 = arith.constant 5.000000e-01 : f32
    %69 = vector.broadcast %cst_35 : f32 to vector<8x128xf32>
    %70 = arith.addf %68, %69 : vector<8x128xf32>
    %71 = vector.extract_strided_slice %54 {offsets = [0, 256], sizes = [8, 128], strides = [1, 1]} : vector<8x512xf32> to vector<8x128xf32>
    %72 = math.tanh %71 : vector<8x128xf32>
    %73 = vector.extract_strided_slice %54 {offsets = [0, 384], sizes = [8, 128], strides = [1, 1]} : vector<8x512xf32> to vector<8x128xf32>
    %cst_36 = arith.constant 5.000000e-01 : f32
    %74 = vector.broadcast %cst_36 : f32 to vector<8x128xf32>
    %75 = arith.mulf %74, %73 : vector<8x128xf32>
    %76 = math.tanh %75 : vector<8x128xf32>
    %cst_37 = arith.constant 5.000000e-01 : f32
    %77 = vector.broadcast %cst_37 : f32 to vector<8x128xf32>
    %78 = arith.mulf %77, %76 : vector<8x128xf32>
    %cst_38 = arith.constant 5.000000e-01 : f32
    %79 = vector.broadcast %cst_38 : f32 to vector<8x128xf32>
    %80 = arith.addf %78, %79 : vector<8x128xf32>
    %81 = arith.mulf %70, %48 : vector<8x128xf32>
    %82 = arith.mulf %62, %72 : vector<8x128xf32>
    %83 = arith.addf %81, %82 : vector<8x128xf32>
    %84 = math.tanh %83 : vector<8x128xf32>
    %85 = arith.mulf %80, %84 : vector<8x128xf32>
    %c16 = arith.constant 16 : index
    %c0_39 = arith.constant 0 : index
    %86 = vector.load %arg9[%c16, %c0_39] : memref<64x512xf32, #tpu.memory_space<vmem>>, vector<8x512xf32>
    %c0_40 = arith.constant 0 : index
    %c0_41 = arith.constant 0 : index
    %87 = vector.load %arg4[%c0_40, %c0_41] : memref<128x512xf32, #tpu.memory_space<vmem>>, vector<128x512xf32>
    %cst_42 = arith.constant dense<0.000000e+00> : vector<8x512xf32>
    %88 = tpu.matmul %85, %87, %cst_42 {dimension_numbers = #tpu.dot_dimension_numbers<[1], [0], [0], [1], [0, 0, 1, 1], [], []>} : vector<8x128xf32>, vector<128x512xf32>, vector<8x512xf32> -> vector<8x512xf32>
    %89 = arith.addf %86, %88 : vector<8x512xf32>
    %90 = vector.extract_strided_slice %89 {offsets = [0, 0], sizes = [8, 128], strides = [1, 1]} : vector<8x512xf32> to vector<8x128xf32>
    %cst_43 = arith.constant 5.000000e-01 : f32
    %91 = vector.broadcast %cst_43 : f32 to vector<8x128xf32>
    %92 = arith.mulf %91, %90 : vector<8x128xf32>
    %93 = math.tanh %92 : vector<8x128xf32>
    %cst_44 = arith.constant 5.000000e-01 : f32
    %94 = vector.broadcast %cst_44 : f32 to vector<8x128xf32>
    %95 = arith.mulf %94, %93 : vector<8x128xf32>
    %cst_45 = arith.constant 5.000000e-01 : f32
    %96 = vector.broadcast %cst_45 : f32 to vector<8x128xf32>
    %97 = arith.addf %95, %96 : vector<8x128xf32>
    %98 = vector.extract_strided_slice %89 {offsets = [0, 128], sizes = [8, 128], strides = [1, 1]} : vector<8x512xf32> to vector<8x128xf32>
    %cst_46 = arith.constant 5.000000e-01 : f32
    %99 = vector.broadcast %cst_46 : f32 to vector<8x128xf32>
    %100 = arith.mulf %99, %98 : vector<8x128xf32>
    %101 = math.tanh %100 : vector<8x128xf32>
    %cst_47 = arith.constant 5.000000e-01 : f32
    %102 = vector.broadcast %cst_47 : f32 to vector<8x128xf32>
    %103 = arith.mulf %102, %101 : vector<8x128xf32>
    %cst_48 = arith.constant 5.000000e-01 : f32
    %104 = vector.broadcast %cst_48 : f32 to vector<8x128xf32>
    %105 = arith.addf %103, %104 : vector<8x128xf32>
    %106 = vector.extract_strided_slice %89 {offsets = [0, 256], sizes = [8, 128], strides = [1, 1]} : vector<8x512xf32> to vector<8x128xf32>
    %107 = math.tanh %106 : vector<8x128xf32>
    %108 = vector.extract_strided_slice %89 {offsets = [0, 384], sizes = [8, 128], strides = [1, 1]} : vector<8x512xf32> to vector<8x128xf32>
    %cst_49 = arith.constant 5.000000e-01 : f32
    %109 = vector.broadcast %cst_49 : f32 to vector<8x128xf32>
    %110 = arith.mulf %109, %108 : vector<8x128xf32>
    %111 = math.tanh %110 : vector<8x128xf32>
    %cst_50 = arith.constant 5.000000e-01 : f32
    %112 = vector.broadcast %cst_50 : f32 to vector<8x128xf32>
    %113 = arith.mulf %112, %111 : vector<8x128xf32>
    %cst_51 = arith.constant 5.000000e-01 : f32
    %114 = vector.broadcast %cst_51 : f32 to vector<8x128xf32>
    %115 = arith.addf %113, %114 : vector<8x128xf32>
    %116 = arith.mulf %105, %83 : vector<8x128xf32>
    %117 = arith.mulf %97, %107 : vector<8x128xf32>
    %118 = arith.addf %116, %117 : vector<8x128xf32>
    %119 = math.tanh %118 : vector<8x128xf32>
    %120 = arith.mulf %115, %119 : vector<8x128xf32>
    %c24 = arith.constant 24 : index
    %c0_52 = arith.constant 0 : index
    %121 = vector.load %arg9[%c24, %c0_52] : memref<64x512xf32, #tpu.memory_space<vmem>>, vector<8x512xf32>
    %c0_53 = arith.constant 0 : index
    %c0_54 = arith.constant 0 : index
    %122 = vector.load %arg4[%c0_53, %c0_54] : memref<128x512xf32, #tpu.memory_space<vmem>>, vector<128x512xf32>
    %cst_55 = arith.constant dense<0.000000e+00> : vector<8x512xf32>
    %123 = tpu.matmul %120, %122, %cst_55 {dimension_numbers = #tpu.dot_dimension_numbers<[1], [0], [0], [1], [0, 0, 1, 1], [], []>} : vector<8x128xf32>, vector<128x512xf32>, vector<8x512xf32> -> vector<8x512xf32>
    %124 = arith.addf %121, %123 : vector<8x512xf32>
    %125 = vector.extract_strided_slice %124 {offsets = [0, 0], sizes = [8, 128], strides = [1, 1]} : vector<8x512xf32> to vector<8x128xf32>
    %cst_56 = arith.constant 5.000000e-01 : f32
    %126 = vector.broadcast %cst_56 : f32 to vector<8x128xf32>
    %127 = arith.mulf %126, %125 : vector<8x128xf32>
    %128 = math.tanh %127 : vector<8x128xf32>
    %cst_57 = arith.constant 5.000000e-01 : f32
    %129 = vector.broadcast %cst_57 : f32 to vector<8x128xf32>
    %130 = arith.mulf %129, %128 : vector<8x128xf32>
    %cst_58 = arith.constant 5.000000e-01 : f32
    %131 = vector.broadcast %cst_58 : f32 to vector<8x128xf32>
    %132 = arith.addf %130, %131 : vector<8x128xf32>
    %133 = vector.extract_strided_slice %124 {offsets = [0, 128], sizes = [8, 128], strides = [1, 1]} : vector<8x512xf32> to vector<8x128xf32>
    %cst_59 = arith.constant 5.000000e-01 : f32
    %134 = vector.broadcast %cst_59 : f32 to vector<8x128xf32>
    %135 = arith.mulf %134, %133 : vector<8x128xf32>
    %136 = math.tanh %135 : vector<8x128xf32>
    %cst_60 = arith.constant 5.000000e-01 : f32
    %137 = vector.broadcast %cst_60 : f32 to vector<8x128xf32>
    %138 = arith.mulf %137, %136 : vector<8x128xf32>
    %cst_61 = arith.constant 5.000000e-01 : f32
    %139 = vector.broadcast %cst_61 : f32 to vector<8x128xf32>
    %140 = arith.addf %138, %139 : vector<8x128xf32>
    %141 = vector.extract_strided_slice %124 {offsets = [0, 256], sizes = [8, 128], strides = [1, 1]} : vector<8x512xf32> to vector<8x128xf32>
    %142 = math.tanh %141 : vector<8x128xf32>
    %143 = vector.extract_strided_slice %124 {offsets = [0, 384], sizes = [8, 128], strides = [1, 1]} : vector<8x512xf32> to vector<8x128xf32>
    %cst_62 = arith.constant 5.000000e-01 : f32
    %144 = vector.broadcast %cst_62 : f32 to vector<8x128xf32>
    %145 = arith.mulf %144, %143 : vector<8x128xf32>
    %146 = math.tanh %145 : vector<8x128xf32>
    %cst_63 = arith.constant 5.000000e-01 : f32
    %147 = vector.broadcast %cst_63 : f32 to vector<8x128xf32>
    %148 = arith.mulf %147, %146 : vector<8x128xf32>
    %cst_64 = arith.constant 5.000000e-01 : f32
    %149 = vector.broadcast %cst_64 : f32 to vector<8x128xf32>
    %150 = arith.addf %148, %149 : vector<8x128xf32>
    %151 = arith.mulf %140, %118 : vector<8x128xf32>
    %152 = arith.mulf %132, %142 : vector<8x128xf32>
    %153 = arith.addf %151, %152 : vector<8x128xf32>
    %154 = math.tanh %153 : vector<8x128xf32>
    %155 = arith.mulf %150, %154 : vector<8x128xf32>
    %c32 = arith.constant 32 : index
    %c0_65 = arith.constant 0 : index
    %156 = vector.load %arg9[%c32, %c0_65] : memref<64x512xf32, #tpu.memory_space<vmem>>, vector<8x512xf32>
    %c0_66 = arith.constant 0 : index
    %c0_67 = arith.constant 0 : index
    %157 = vector.load %arg4[%c0_66, %c0_67] : memref<128x512xf32, #tpu.memory_space<vmem>>, vector<128x512xf32>
    %cst_68 = arith.constant dense<0.000000e+00> : vector<8x512xf32>
    %158 = tpu.matmul %155, %157, %cst_68 {dimension_numbers = #tpu.dot_dimension_numbers<[1], [0], [0], [1], [0, 0, 1, 1], [], []>} : vector<8x128xf32>, vector<128x512xf32>, vector<8x512xf32> -> vector<8x512xf32>
    %159 = arith.addf %156, %158 : vector<8x512xf32>
    %160 = vector.extract_strided_slice %159 {offsets = [0, 0], sizes = [8, 128], strides = [1, 1]} : vector<8x512xf32> to vector<8x128xf32>
    %cst_69 = arith.constant 5.000000e-01 : f32
    %161 = vector.broadcast %cst_69 : f32 to vector<8x128xf32>
    %162 = arith.mulf %161, %160 : vector<8x128xf32>
    %163 = math.tanh %162 : vector<8x128xf32>
    %cst_70 = arith.constant 5.000000e-01 : f32
    %164 = vector.broadcast %cst_70 : f32 to vector<8x128xf32>
    %165 = arith.mulf %164, %163 : vector<8x128xf32>
    %cst_71 = arith.constant 5.000000e-01 : f32
    %166 = vector.broadcast %cst_71 : f32 to vector<8x128xf32>
    %167 = arith.addf %165, %166 : vector<8x128xf32>
    %168 = vector.extract_strided_slice %159 {offsets = [0, 128], sizes = [8, 128], strides = [1, 1]} : vector<8x512xf32> to vector<8x128xf32>
    %cst_72 = arith.constant 5.000000e-01 : f32
    %169 = vector.broadcast %cst_72 : f32 to vector<8x128xf32>
    %170 = arith.mulf %169, %168 : vector<8x128xf32>
    %171 = math.tanh %170 : vector<8x128xf32>
    %cst_73 = arith.constant 5.000000e-01 : f32
    %172 = vector.broadcast %cst_73 : f32 to vector<8x128xf32>
    %173 = arith.mulf %172, %171 : vector<8x128xf32>
    %cst_74 = arith.constant 5.000000e-01 : f32
    %174 = vector.broadcast %cst_74 : f32 to vector<8x128xf32>
    %175 = arith.addf %173, %174 : vector<8x128xf32>
    %176 = vector.extract_strided_slice %159 {offsets = [0, 256], sizes = [8, 128], strides = [1, 1]} : vector<8x512xf32> to vector<8x128xf32>
    %177 = math.tanh %176 : vector<8x128xf32>
    %178 = vector.extract_strided_slice %159 {offsets = [0, 384], sizes = [8, 128], strides = [1, 1]} : vector<8x512xf32> to vector<8x128xf32>
    %cst_75 = arith.constant 5.000000e-01 : f32
    %179 = vector.broadcast %cst_75 : f32 to vector<8x128xf32>
    %180 = arith.mulf %179, %178 : vector<8x128xf32>
    %181 = math.tanh %180 : vector<8x128xf32>
    %cst_76 = arith.constant 5.000000e-01 : f32
    %182 = vector.broadcast %cst_76 : f32 to vector<8x128xf32>
    %183 = arith.mulf %182, %181 : vector<8x128xf32>
    %cst_77 = arith.constant 5.000000e-01 : f32
    %184 = vector.broadcast %cst_77 : f32 to vector<8x128xf32>
    %185 = arith.addf %183, %184 : vector<8x128xf32>
    %186 = arith.mulf %175, %153 : vector<8x128xf32>
    %187 = arith.mulf %167, %177 : vector<8x128xf32>
    %188 = arith.addf %186, %187 : vector<8x128xf32>
    %189 = math.tanh %188 : vector<8x128xf32>
    %190 = arith.mulf %185, %189 : vector<8x128xf32>
    %c40 = arith.constant 40 : index
    %c0_78 = arith.constant 0 : index
    %191 = vector.load %arg9[%c40, %c0_78] : memref<64x512xf32, #tpu.memory_space<vmem>>, vector<8x512xf32>
    %c0_79 = arith.constant 0 : index
    %c0_80 = arith.constant 0 : index
    %192 = vector.load %arg4[%c0_79, %c0_80] : memref<128x512xf32, #tpu.memory_space<vmem>>, vector<128x512xf32>
    %cst_81 = arith.constant dense<0.000000e+00> : vector<8x512xf32>
    %193 = tpu.matmul %190, %192, %cst_81 {dimension_numbers = #tpu.dot_dimension_numbers<[1], [0], [0], [1], [0, 0, 1, 1], [], []>} : vector<8x128xf32>, vector<128x512xf32>, vector<8x512xf32> -> vector<8x512xf32>
    %194 = arith.addf %191, %193 : vector<8x512xf32>
    %195 = vector.extract_strided_slice %194 {offsets = [0, 0], sizes = [8, 128], strides = [1, 1]} : vector<8x512xf32> to vector<8x128xf32>
    %cst_82 = arith.constant 5.000000e-01 : f32
    %196 = vector.broadcast %cst_82 : f32 to vector<8x128xf32>
    %197 = arith.mulf %196, %195 : vector<8x128xf32>
    %198 = math.tanh %197 : vector<8x128xf32>
    %cst_83 = arith.constant 5.000000e-01 : f32
    %199 = vector.broadcast %cst_83 : f32 to vector<8x128xf32>
    %200 = arith.mulf %199, %198 : vector<8x128xf32>
    %cst_84 = arith.constant 5.000000e-01 : f32
    %201 = vector.broadcast %cst_84 : f32 to vector<8x128xf32>
    %202 = arith.addf %200, %201 : vector<8x128xf32>
    %203 = vector.extract_strided_slice %194 {offsets = [0, 128], sizes = [8, 128], strides = [1, 1]} : vector<8x512xf32> to vector<8x128xf32>
    %cst_85 = arith.constant 5.000000e-01 : f32
    %204 = vector.broadcast %cst_85 : f32 to vector<8x128xf32>
    %205 = arith.mulf %204, %203 : vector<8x128xf32>
    %206 = math.tanh %205 : vector<8x128xf32>
    %cst_86 = arith.constant 5.000000e-01 : f32
    %207 = vector.broadcast %cst_86 : f32 to vector<8x128xf32>
    %208 = arith.mulf %207, %206 : vector<8x128xf32>
    %cst_87 = arith.constant 5.000000e-01 : f32
    %209 = vector.broadcast %cst_87 : f32 to vector<8x128xf32>
    %210 = arith.addf %208, %209 : vector<8x128xf32>
    %211 = vector.extract_strided_slice %194 {offsets = [0, 256], sizes = [8, 128], strides = [1, 1]} : vector<8x512xf32> to vector<8x128xf32>
    %212 = math.tanh %211 : vector<8x128xf32>
    %213 = vector.extract_strided_slice %194 {offsets = [0, 384], sizes = [8, 128], strides = [1, 1]} : vector<8x512xf32> to vector<8x128xf32>
    %cst_88 = arith.constant 5.000000e-01 : f32
    %214 = vector.broadcast %cst_88 : f32 to vector<8x128xf32>
    %215 = arith.mulf %214, %213 : vector<8x128xf32>
    %216 = math.tanh %215 : vector<8x128xf32>
    %cst_89 = arith.constant 5.000000e-01 : f32
    %217 = vector.broadcast %cst_89 : f32 to vector<8x128xf32>
    %218 = arith.mulf %217, %216 : vector<8x128xf32>
    %cst_90 = arith.constant 5.000000e-01 : f32
    %219 = vector.broadcast %cst_90 : f32 to vector<8x128xf32>
    %220 = arith.addf %218, %219 : vector<8x128xf32>
    %221 = arith.mulf %210, %188 : vector<8x128xf32>
    %222 = arith.mulf %202, %212 : vector<8x128xf32>
    %223 = arith.addf %221, %222 : vector<8x128xf32>
    %224 = math.tanh %223 : vector<8x128xf32>
    %225 = arith.mulf %220, %224 : vector<8x128xf32>
    %c48 = arith.constant 48 : index
    %c0_91 = arith.constant 0 : index
    %226 = vector.load %arg9[%c48, %c0_91] : memref<64x512xf32, #tpu.memory_space<vmem>>, vector<8x512xf32>
    %c0_92 = arith.constant 0 : index
    %c0_93 = arith.constant 0 : index
    %227 = vector.load %arg4[%c0_92, %c0_93] : memref<128x512xf32, #tpu.memory_space<vmem>>, vector<128x512xf32>
    %cst_94 = arith.constant dense<0.000000e+00> : vector<8x512xf32>
    %228 = tpu.matmul %225, %227, %cst_94 {dimension_numbers = #tpu.dot_dimension_numbers<[1], [0], [0], [1], [0, 0, 1, 1], [], []>} : vector<8x128xf32>, vector<128x512xf32>, vector<8x512xf32> -> vector<8x512xf32>
    %229 = arith.addf %226, %228 : vector<8x512xf32>
    %230 = vector.extract_strided_slice %229 {offsets = [0, 0], sizes = [8, 128], strides = [1, 1]} : vector<8x512xf32> to vector<8x128xf32>
    %cst_95 = arith.constant 5.000000e-01 : f32
    %231 = vector.broadcast %cst_95 : f32 to vector<8x128xf32>
    %232 = arith.mulf %231, %230 : vector<8x128xf32>
    %233 = math.tanh %232 : vector<8x128xf32>
    %cst_96 = arith.constant 5.000000e-01 : f32
    %234 = vector.broadcast %cst_96 : f32 to vector<8x128xf32>
    %235 = arith.mulf %234, %233 : vector<8x128xf32>
    %cst_97 = arith.constant 5.000000e-01 : f32
    %236 = vector.broadcast %cst_97 : f32 to vector<8x128xf32>
    %237 = arith.addf %235, %236 : vector<8x128xf32>
    %238 = vector.extract_strided_slice %229 {offsets = [0, 128], sizes = [8, 128], strides = [1, 1]} : vector<8x512xf32> to vector<8x128xf32>
    %cst_98 = arith.constant 5.000000e-01 : f32
    %239 = vector.broadcast %cst_98 : f32 to vector<8x128xf32>
    %240 = arith.mulf %239, %238 : vector<8x128xf32>
    %241 = math.tanh %240 : vector<8x128xf32>
    %cst_99 = arith.constant 5.000000e-01 : f32
    %242 = vector.broadcast %cst_99 : f32 to vector<8x128xf32>
    %243 = arith.mulf %242, %241 : vector<8x128xf32>
    %cst_100 = arith.constant 5.000000e-01 : f32
    %244 = vector.broadcast %cst_100 : f32 to vector<8x128xf32>
    %245 = arith.addf %243, %244 : vector<8x128xf32>
    %246 = vector.extract_strided_slice %229 {offsets = [0, 256], sizes = [8, 128], strides = [1, 1]} : vector<8x512xf32> to vector<8x128xf32>
    %247 = math.tanh %246 : vector<8x128xf32>
    %248 = vector.extract_strided_slice %229 {offsets = [0, 384], sizes = [8, 128], strides = [1, 1]} : vector<8x512xf32> to vector<8x128xf32>
    %cst_101 = arith.constant 5.000000e-01 : f32
    %249 = vector.broadcast %cst_101 : f32 to vector<8x128xf32>
    %250 = arith.mulf %249, %248 : vector<8x128xf32>
    %251 = math.tanh %250 : vector<8x128xf32>
    %cst_102 = arith.constant 5.000000e-01 : f32
    %252 = vector.broadcast %cst_102 : f32 to vector<8x128xf32>
    %253 = arith.mulf %252, %251 : vector<8x128xf32>
    %cst_103 = arith.constant 5.000000e-01 : f32
    %254 = vector.broadcast %cst_103 : f32 to vector<8x128xf32>
    %255 = arith.addf %253, %254 : vector<8x128xf32>
    %256 = arith.mulf %245, %223 : vector<8x128xf32>
    %257 = arith.mulf %237, %247 : vector<8x128xf32>
    %258 = arith.addf %256, %257 : vector<8x128xf32>
    %259 = math.tanh %258 : vector<8x128xf32>
    %260 = arith.mulf %255, %259 : vector<8x128xf32>
    %c56 = arith.constant 56 : index
    %c0_104 = arith.constant 0 : index
    %261 = vector.load %arg9[%c56, %c0_104] : memref<64x512xf32, #tpu.memory_space<vmem>>, vector<8x512xf32>
    %c0_105 = arith.constant 0 : index
    %c0_106 = arith.constant 0 : index
    %262 = vector.load %arg4[%c0_105, %c0_106] : memref<128x512xf32, #tpu.memory_space<vmem>>, vector<128x512xf32>
    %cst_107 = arith.constant dense<0.000000e+00> : vector<8x512xf32>
    %263 = tpu.matmul %260, %262, %cst_107 {dimension_numbers = #tpu.dot_dimension_numbers<[1], [0], [0], [1], [0, 0, 1, 1], [], []>} : vector<8x128xf32>, vector<128x512xf32>, vector<8x512xf32> -> vector<8x512xf32>
    %264 = arith.addf %261, %263 : vector<8x512xf32>
    %265 = vector.extract_strided_slice %264 {offsets = [0, 0], sizes = [8, 128], strides = [1, 1]} : vector<8x512xf32> to vector<8x128xf32>
    %cst_108 = arith.constant 5.000000e-01 : f32
    %266 = vector.broadcast %cst_108 : f32 to vector<8x128xf32>
    %267 = arith.mulf %266, %265 : vector<8x128xf32>
    %268 = math.tanh %267 : vector<8x128xf32>
    %cst_109 = arith.constant 5.000000e-01 : f32
    %269 = vector.broadcast %cst_109 : f32 to vector<8x128xf32>
    %270 = arith.mulf %269, %268 : vector<8x128xf32>
    %cst_110 = arith.constant 5.000000e-01 : f32
    %271 = vector.broadcast %cst_110 : f32 to vector<8x128xf32>
    %272 = arith.addf %270, %271 : vector<8x128xf32>
    %273 = vector.extract_strided_slice %264 {offsets = [0, 128], sizes = [8, 128], strides = [1, 1]} : vector<8x512xf32> to vector<8x128xf32>
    %cst_111 = arith.constant 5.000000e-01 : f32
    %274 = vector.broadcast %cst_111 : f32 to vector<8x128xf32>
    %275 = arith.mulf %274, %273 : vector<8x128xf32>
    %276 = math.tanh %275 : vector<8x128xf32>
    %cst_112 = arith.constant 5.000000e-01 : f32
    %277 = vector.broadcast %cst_112 : f32 to vector<8x128xf32>
    %278 = arith.mulf %277, %276 : vector<8x128xf32>
    %cst_113 = arith.constant 5.000000e-01 : f32
    %279 = vector.broadcast %cst_113 : f32 to vector<8x128xf32>
    %280 = arith.addf %278, %279 : vector<8x128xf32>
    %281 = vector.extract_strided_slice %264 {offsets = [0, 256], sizes = [8, 128], strides = [1, 1]} : vector<8x512xf32> to vector<8x128xf32>
    %282 = math.tanh %281 : vector<8x128xf32>
    %283 = vector.extract_strided_slice %264 {offsets = [0, 384], sizes = [8, 128], strides = [1, 1]} : vector<8x512xf32> to vector<8x128xf32>
    %cst_114 = arith.constant 5.000000e-01 : f32
    %284 = vector.broadcast %cst_114 : f32 to vector<8x128xf32>
    %285 = arith.mulf %284, %283 : vector<8x128xf32>
    %286 = math.tanh %285 : vector<8x128xf32>
    %cst_115 = arith.constant 5.000000e-01 : f32
    %287 = vector.broadcast %cst_115 : f32 to vector<8x128xf32>
    %288 = arith.mulf %287, %286 : vector<8x128xf32>
    %cst_116 = arith.constant 5.000000e-01 : f32
    %289 = vector.broadcast %cst_116 : f32 to vector<8x128xf32>
    %290 = arith.addf %288, %289 : vector<8x128xf32>
    %291 = arith.mulf %280, %258 : vector<8x128xf32>
    %292 = arith.mulf %272, %282 : vector<8x128xf32>
    %293 = arith.addf %291, %292 : vector<8x128xf32>
    %294 = math.tanh %293 : vector<8x128xf32>
    %295 = arith.mulf %290, %294 : vector<8x128xf32>
    %c0_117 = arith.constant 0 : index
    %c0_118 = arith.constant 0 : index
    %296 = vector.load %arg10[%c0_117, %c0_118] : memref<8x128xf32, #tpu.memory_space<vmem>>, vector<8x128xf32>
    tpu.vector_store %arg10[%c0_117, %c0_118], %295 {strides = array<i32>} : memref<8x128xf32, #tpu.memory_space<vmem>>, vector<8x128xf32>,
    %c0_119 = arith.constant 0 : index
    %c0_120 = arith.constant 0 : index
    %297 = vector.load %arg11[%c0_119, %c0_120] : memref<8x128xf32, #tpu.memory_space<vmem>>, vector<8x128xf32>
    tpu.vector_store %arg11[%c0_119, %c0_120], %293 {strides = array<i32>} : memref<8x128xf32, #tpu.memory_space<vmem>>, vector<8x128xf32>,
    %c0_i32_121 = arith.constant 0 : i32
    %298 = arith.cmpi eq, %arg1, %c0_i32_121 : i32
    %299 = arith.extui %298 : i1 to i32
    %c0_i32_122 = arith.constant 0 : i32
    %300 = arith.cmpi ne, %299, %c0_i32_122 : i32
    scf.if %300 {
      %c0_123 = arith.constant 0 : index
      %c0_124 = arith.constant 0 : index
      %301 = vector.load %arg6[%c0_123, %c0_124] : memref<128x128xf32, #tpu.memory_space<vmem>>, vector<128x128xf32>
      %cst_125 = arith.constant dense<0.000000e+00> : vector<8x128xf32>
      %302 = tpu.matmul %295, %301, %cst_125 {dimension_numbers = #tpu.dot_dimension_numbers<[1], [0], [0], [1], [0, 0, 1, 1], [], []>} : vector<8x128xf32>, vector<128x128xf32>, vector<8x128xf32> -> vector<8x128xf32>
      %c0_126 = arith.constant 0 : index
      %c0_127 = arith.constant 0 : index
      %303 = vector.load %arg7[%c0_126, %c0_127] : memref<1x128xf32, #tpu.memory_space<vmem>>, vector<1x128xf32>
      %304 = vector.broadcast %303 : vector<1x128xf32> to vector<8x128xf32>
      %305 = arith.addf %302, %304 : vector<8x128xf32>
      %c0_128 = arith.constant 0 : index
      %c0_129 = arith.constant 0 : index
      %306 = vector.load %arg8[%c0_128, %c0_129] : memref<8x128xf32, #tpu.memory_space<vmem>>, vector<8x128xf32>
      tpu.vector_store %arg8[%c0_128, %c0_129], %305 {strides = array<i32>} : memref<8x128xf32, #tpu.memory_space<vmem>>, vector<8x128xf32>,
    } else {
    }
    return
  }
  func.func @transform_0(%arg0: i32, %arg1: i32) -> (i32, i32, i32) {
    %c0_i32 = arith.constant 0 : i32
    %c0_i32_0 = arith.constant 0 : i32
    return %arg0, %arg1, %c0_i32 : i32, i32, i32
  }
  func.func @transform_1(%arg0: i32, %arg1: i32) -> (i32, i32) {
    %c0_i32 = arith.constant 0 : i32
    %c0_i32_0 = arith.constant 0 : i32
    %c0_i32_1 = arith.constant 0 : i32
    return %c0_i32, %c0_i32_0 : i32, i32
  }
  func.func @transform_2(%arg0: i32, %arg1: i32) -> (i32, i32) {
    %c0_i32 = arith.constant 0 : i32
    %c0_i32_0 = arith.constant 0 : i32
    %c0_i32_1 = arith.constant 0 : i32
    return %c0_i32, %c0_i32_0 : i32, i32
  }
  func.func @transform_3(%arg0: i32, %arg1: i32) -> (i32, i32) {
    %c0_i32 = arith.constant 0 : i32
    %c0_i32_0 = arith.constant 0 : i32
    %c0_i32_1 = arith.constant 0 : i32
    return %c0_i32, %c0_i32_0 : i32, i32
  }
  func.func @transform_4(%arg0: i32, %arg1: i32) -> (i32, i32) {
    %c0_i32 = arith.constant 0 : i32
    %c0_i32_0 = arith.constant 0 : i32
    %c0_i32_1 = arith.constant 0 : i32
    return %c0_i32, %c0_i32_0 : i32, i32
  }
  func.func @transform_5(%arg0: i32, %arg1: i32) -> (i32, i32) {
    %c0_i32 = arith.constant 0 : i32
    %c0_i32_0 = arith.constant 0 : i32
    %c0_i32_1 = arith.constant 0 : i32
    return %c0_i32, %c0_i32_0 : i32, i32
  }
  func.func @transform_6(%arg0: i32, %arg1: i32) -> (i32, i32) {
    %c0_i32 = arith.constant 0 : i32
    %c0_i32_0 = arith.constant 0 : i32
    return %arg0, %c0_i32 : i32, i32
  }
}

</mosaic_0001>

<bundles_post_ra>
// kernel: tpu_custom_call.1
= control target key start
LH: loop header
LB: loop body
LE: loop exit
PB: predicated region body
PF: predicated region fallthrough
CT: control target
= control target key end

     0   :  { %11 = vsyncpa [#allocation6], 0  ;;  %s3087_s0 = inlined_call_operand.vmem [shape: f32[1,64,1], index: 0, kind: input, shape index: {}]   ;;  %s3088_s1 = inlined_call_operand.vmem [shape: f32[1,512], index: 1, kind: input, shape index: {}]   ;;  %s3089_s2 = inlined_call_operand.hbm [shape: f32[128,512], index: 2, kind: input, shape index: {}]   ;;  %s3090_s3 = inlined_call_operand.vmem [shape: f32[1,512], index: 3, kind: input, shape index: {}]   ;;  %s3091_s4 = inlined_call_operand.hbm [shape: f32[128,128], index: 4, kind: input, shape index: {}]   ;;  %s3092_s5 = inlined_call_operand.vmem [shape: f32[1,128], index: 5, kind: input, shape index: {}]   ;;  %s3093_s6 = inlined_call_operand.hbm [shape: f32[8,128], index: 6, kind: output, shape index: {}]  }
   0x1   :  { %12 = vsyncpa [#allocation9], 0 }
   0x2   :  { %13 = vsyncpa [#allocation7], 0  ;;  %s2525_s21 = smov [#allocation5]   ;;  %s2453_s25 = scalar_lea.hbm %s3089_s2, 8192 }
   0x3   :  { %s23_s22 = sshll.u32 %s2525_s21, 4  ;;  %p2454_p0 = scmp.ne.s32.totalorder %s3089_s2, %s2453_s25  ;;  %s24_s22 = int_to_ptr.vmem [resolvable:$true] %s23_s22 }
   0x4   :  { %p2457_p1 = scmp.lt.u32.totalorder %s2453_s25, %s3089_s2 }
   0x6   :  { %p2459_p2 = pnand %p2457_p1, %p2454_p0 }
   0x8   :  { %2462 = shalt.err (!%p2459_p2)
}
   0x9   :  { %s2463_s30 = scalar_lea.vmem %s24_s22, 8192  ;;  %p2468_p4 = scmp.lt.s32.totalorder %s24_s22, %s24_s22 }
   0xa   :  { %p2464_p3 = scmp.ne.s32.totalorder %s24_s22, %s2463_s30  ;;  %p2469_p5 = scmp.lt.s32.totalorder %s2463_s30, %s2463_s30 }
   0xc   :  { %p2470_p6 = por %p2469_p5, %p2468_p4 }
   0xe   :  { %p2471_p7 = pnand %p2470_p6, %p2464_p3 }
  0x10   :  { %2474 = shalt.err (!%p2471_p7)
}
  0x11   :  { %s2526_s7 = smov 512   ;;  %s2527_s8 = smov 32  }
  0x12   :  { %29 = dma.hbm_to_vmem [thread:$0]  %s3089_s2, 8192, %s24_s22, [#allocation6], %s2526_s7, %s2526_s7, %s2527_s8  }
  0x13   :  { %s2528_s11 = smov [#allocation8]   ;;  %s2475_s15 = scalar_lea.hbm %s3091_s4, 2048 }
  0x14   :  { %s37_s12 = sshll.u32 %s2528_s11, 4  ;;  %p2476_p8 = scmp.ne.s32.totalorder %s3091_s4, %s2475_s15  ;;  %s38_s12 = int_to_ptr.vmem [resolvable:$true] %s37_s12 }
  0x15   :  { %p2479_p9 = scmp.lt.u32.totalorder %s2475_s15, %s3091_s4 }
  0x17   :  { %p2481_p10 = pnand %p2479_p9, %p2476_p8 }
  0x19   :  { %2484 = shalt.err (!%p2481_p10)
}
  0x1a   :  { %s2485_s20 = scalar_lea.vmem %s38_s12, 2048  ;;  %p2490_p12 = scmp.lt.s32.totalorder %s38_s12, %s38_s12 }
  0x1b   :  { %p2486_p11 = scmp.ne.s32.totalorder %s38_s12, %s2485_s20  ;;  %p2491_p13 = scmp.lt.s32.totalorder %s2485_s20, %s2485_s20 }
  0x1d   :  { %p2492_p0 = por %p2491_p13, %p2490_p12 }
  0x1f   :  { %p2493_p1 = pnand %p2492_p0, %p2486_p11 }
  0x21   :  { %2496 = shalt.err (!%p2493_p1)
}
  0x22   :  { %s2529_s2 = smov 128   ;;  %s2530_s21 = smov 8  }
  0x23   :  { %43 = dma.hbm_to_vmem [thread:$0]  %s3091_s4, 2048, %s38_s12, [#allocation9], %s2529_s2, %s2529_s2, %s2530_s21  }
  0x24   :  { %2519 = dma.done.wait [#allocation6], 8192  }
  0x25   :  { %2520 = vsyncadd [#allocation6], 4294959104 }
  0x26   :  { %2521 = dma.done.wait [#allocation9], 2048  }
  0x27   :  { %2522 = vsyncadd [#allocation9], 4294965248  ;;  %v2531_v0 = vmov 0.0   ;;  %v2532_v1 = vmov 0   ;;  %v253_v2 = vld [vmem:[#allocation5 + $0x8] sm:$0xff]  ;;  %v255_v4 = vld [vmem:[#allocation5 + $0x18] sm:$0xff] }
  0x28   :  { %380 = vmatprep.mubr.f32.mxu0 %v2531_v0  ;;  %451 = vmatprep.mubr.f32.mxu1 %v2531_v0  ;;  %v257_v3 = vld [vmem:[#allocation5 + $0x28] sm:$0xff]  ;;  %v259_v6 = vld [vmem:[#allocation5 + $0x38] sm:$0xff]  ;;  %v252_v7 = vld [vmem:[#allocation5] sm:$0xff]  ;;  %vm2534_vm0 = vmmov 0   ;;  %s2535_s18 = smov [#allocation10]  }
  0x29   :  { %2371 = vset.pattern.permute.xlu0 %v2532_v1  ;;  %2372 = vset.pattern.permute.xlu1 %v2532_v1  ;;  %v2597_v5 = vpack.c.bf16 %v257_v3, %v253_v2  ;;  %v256_v8 = vld [vmem:[#allocation5 + $0x20] sm:$0xff]  ;;  %v2599_v9 = vpack.c.bf16 %v259_v6, %v255_v4  ;;  %v254_v11 = vld [vmem:[#allocation5 + $0x10] sm:$0xff]  ;;  %v261_v13 = vld [vmem:[#allocation5 + $0x48] sm:$0xff]  ;;  %s1761_s19 = sshll.u32 %s2535_s18, 4  ;;  %s1762_s19 = int_to_ptr.vmem [resolvable:$true] %s1761_s19 }
  0x2a   :  { %v2601_v10 = vpack.c.bf16 %v256_v8, %v252_v7  ;;  %v258_v12 = vld [vmem:[#allocation5 + $0x30] sm:$0xff]  ;;  %v265_v15 = vld [vmem:[#allocation5 + $0x68] sm:$0xff]  ;;  %v263_v16 = vld [vmem:[#allocation5 + $0x58] sm:$0xff]  ;;  %s2497_s20 = scalar_lea.vmem %s1762_s19, 128  ;;  %p2502_p3 = scmp.lt.s32.totalorder %s1762_s19, %s1762_s19 }
  0x2b   :  { %1825 = vmatprep.subr.bf16.mxu0 %v2597_v5  ;;  %v2604_v14 = vpack.c.bf16 %v258_v12, %v254_v11  ;;  %v267_v17 = vld [vmem:[#allocation5 + $0x78] sm:$0xff]  ;;  %1857 = vmatprep.subr.bf16.mxu1 %v2599_v9  ;;  %v2608_v18 = vpack.c.bf16 %v265_v15, %v261_v13  ;;  %v260_v20 = vld [vmem:[#allocation5 + $0x40] sm:$0xff]  ;;  %v262_v22 = vld [vmem:[#allocation5 + $0x50] sm:$0xff]  ;;  %p2498_p2 = scmp.ne.s32.totalorder %s1762_s19, %s2497_s20  ;;  %p2503_p4 = scmp.lt.s32.totalorder %s2497_s20, %s2497_s20 }
  0x2c   :  { %1827 = vmatpush1.bf16.msra.mxu0 %v2601_v10  ;;  %v2610_v19 = vpack.c.bf16 %v267_v17, %v263_v16  ;;  %v264_v21 = vld [vmem:[#allocation5 + $0x60] sm:$0xff]  ;;  %v266_v24 = vld [vmem:[#allocation5 + $0x70] sm:$0xff]  ;;  %v269_v25 = vld [vmem:[#allocation5 + $0x88] sm:$0xff] }
  0x2d   :  { %1859 = vmatpush1.bf16.msra.mxu1 %v2604_v14  ;;  %v2613_v23 = vpack.c.bf16 %v264_v21, %v260_v20  ;;  %v273_v26 = vld [vmem:[#allocation5 + $0xa8] sm:$0xff]  ;;  %1829 = vmatprep.subr.bf16.mxu0 %v2608_v18  ;;  %v2617_v27 = vpack.c.bf16 %v266_v24, %v262_v22  ;;  %v271_v29 = vld [vmem:[#allocation5 + $0x98] sm:$0xff]  ;;  %v268_v31 = vld [vmem:[#allocation5 + $0x80] sm:$0xff]  ;;  %p2504_p5 = por %p2503_p4, %p2502_p3 }
  0x2e   :  { %1861 = vmatprep.subr.bf16.mxu1 %v2610_v19  ;;  %v2619_v28 = vpack.c.bf16 %v273_v26, %v269_v25  ;;  %v275_v30 = vld [vmem:[#allocation5 + $0xb8] sm:$0xff]  ;;  %v272_v33 = vld [vmem:[#allocation5 + $0xa0] sm:$0xff]  ;;  %v270_v34 = vld [vmem:[#allocation5 + $0x90] sm:$0xff] }
  0x2f   :  { %v2621_v32 = vpack.c.bf16 %v275_v30, %v271_v29  ;;  %v274_v35 = vld [vmem:[#allocation5 + $0xb0] sm:$0xff]  ;;  %v2624_v36 = vpack.c.bf16 %v272_v33, %v268_v31  ;;  %v277_v37 = vld [vmem:[#allocation5 + $0xc8] sm:$0xff]  ;;  %v279_v39 = vld [vmem:[#allocation5 + $0xd8] sm:$0xff]  ;;  %p2505_p6 = pnand %p2504_p5, %p2498_p2 }
  0x30   :  { %1831 = vmatpush1.bf16.msra.mxu0 %v2613_v23  ;;  %v281_v38 = vld [vmem:[#allocation5 + $0xe8] sm:$0xff]  ;;  %v2628_v40 = vpack.c.bf16 %v274_v35, %v270_v34  ;;  %v283_v42 = vld [vmem:[#allocation5 + $0xf8] sm:$0xff]  ;;  %v276_v43 = vld [vmem:[#allocation5 + $0xc0] sm:$0xff] }
  0x31   :  { %1863 = vmatpush1.bf16.msra.mxu1 %v2617_v27  ;;  %1833 = vmatprep.subr.bf16.mxu0 %v2619_v28  ;;  %v2630_v41 = vpack.c.bf16 %v281_v38, %v277_v37  ;;  %v280_v44 = vld [vmem:[#allocation5 + $0xe0] sm:$0xff]  ;;  %v2633_v45 = vpack.c.bf16 %v283_v42, %v279_v39  ;;  %v278_v46 = vld [vmem:[#allocation5 + $0xd0] sm:$0xff]  ;;  %v285_v48 = vld [vmem:[#allocation5 + $0x108] sm:$0xff] }
  0x32   :  { %1865 = vmatprep.subr.bf16.mxu1 %v2621_v32  ;;  %v282_v47 = vld [vmem:[#allocation5 + $0xf0] sm:$0xff]  ;;  %v289_v49 = vld [vmem:[#allocation5 + $0x128] sm:$0xff]  ;;  %v287_v50 = vld [vmem:[#allocation5 + $0x118] sm:$0xff]  ;;  %v2636_v52 = vpack.c.bf16 %v280_v44, %v276_v43 }
  0x33   :  { %v291_v51 = vld [vmem:[#allocation5 + $0x138] sm:$0xff]  ;;  %v2640_v53 = vpack.c.bf16 %v282_v47, %v278_v46  ;;  %v2642_v54 = vpack.c.bf16 %v289_v49, %v285_v48  ;;  %v284_v55 = vld [vmem:[#allocation5 + $0x100] sm:$0xff]  ;;  %v286_v57 = vld [vmem:[#allocation5 + $0x110] sm:$0xff] }
  0x34   :  { %1835 = vmatpush1.bf16.msra.mxu0 %v2624_v36  ;;  %v288_v56 = vld [vmem:[#allocation5 + $0x120] sm:$0xff]  ;;  %v2645_v58 = vpack.c.bf16 %v291_v51, %v287_v50  ;;  %v290_v59 = vld [vmem:[#allocation5 + $0x130] sm:$0xff]  ;;  %v293_v60 = vld [vmem:[#allocation5 + $0x148] sm:$0xff] }
  0x35   :  { %1867 = vmatpush1.bf16.msra.mxu1 %v2628_v40  ;;  %1837 = vmatprep.subr.bf16.mxu0 %v2630_v41  ;;  %v297_v61 = vld [vmem:[#allocation5 + $0x168] sm:$0xff]  ;;  %v295_v62 = vld [vmem:[#allocation5 + $0x158] sm:$0xff]  ;;  %v2648_v1 = vpack.c.bf16 %v288_v56, %v284_v55  ;;  %v2652_v2 = vpack.c.bf16 %v290_v59, %v286_v57  ;;  %v292_v4 = vld [vmem:[#allocation5 + $0x140] sm:$0xff]  ;;  %v69_v56 = vlaneseq }
  0x36   :  { %1869 = vmatprep.subr.bf16.mxu1 %v2633_v45  ;;  %v299_v63 = vld [vmem:[#allocation5 + $0x178] sm:$0xff]  ;;  %v2654_v3 = vpack.c.bf16 %v297_v61, %v293_v60  ;;  %v296_v6 = vld [vmem:[#allocation5 + $0x160] sm:$0xff]  ;;  %v294_v7 = vld [vmem:[#allocation5 + $0x150] sm:$0xff] }
  0x37   :  { %v2657_v8 = vpack.c.bf16 %v299_v63, %v295_v62  ;;  %v298_v11 = vld [vmem:[#allocation5 + $0x170] sm:$0xff]  ;;  %v301_v12 = vld [vmem:[#allocation5 + $0x188] sm:$0xff]  ;;  %v303_v15 = vld [vmem:[#allocation5 + $0x198] sm:$0xff]  ;;  %v2660_v17 = vpack.c.bf16 %v296_v6, %v292_v4  ;;  %v70_v57 = vshrl.u32 %v69_v56, 7 }
  0x38   :  { %1839 = vmatpush1.bf16.msra.mxu0 %v2636_v52  ;;  %v305_v13 = vld [vmem:[#allocation5 + $0x1a8] sm:$0xff]  ;;  %v307_v16 = vld [vmem:[#allocation5 + $0x1b8] sm:$0xff]  ;;  %v300_v20 = vld [vmem:[#allocation5 + $0x180] sm:$0xff]  ;;  %v2664_v21 = vpack.c.bf16 %v298_v11, %v294_v7 }
  0x39   :  { %1871 = vmatpush1.bf16.msra.mxu1 %v2640_v53  ;;  %1841 = vmatprep.subr.bf16.mxu0 %v2642_v54  ;;  %v2666_v22 = vpack.c.bf16 %v305_v13, %v301_v12  ;;  %v304_v24 = vld [vmem:[#allocation5 + $0x1a0] sm:$0xff]  ;;  %v302_v25 = vld [vmem:[#allocation5 + $0x190] sm:$0xff]  ;;  %v2672_v29 = vpack.c.bf16 %v307_v16, %v303_v15  ;;  %v309_v31 = vld [vmem:[#allocation5 + $0x1c8] sm:$0xff]  ;;  %v71_v59 = vsub.s32 0, %v70_v57  ;;  %v75_v61 = vsub.s32 1, %v70_v57 }
  0x3a   :  { %1873 = vmatprep.subr.bf16.mxu1 %v2645_v58  ;;  %v58_v26 = vld [vmem:[%s3087_s0] sm:$0xff]  ;;  %v306_v30 = vld [vmem:[#allocation5 + $0x1b0] sm:$0xff]  ;;  %v313_v33 = vld [vmem:[#allocation5 + $0x1e8] sm:$0xff]  ;;  %v2678_v38 = vpack.c.bf16 %v304_v24, %v300_v20  ;;  %v79_v62 = vsub.s32 2, %v70_v57  ;;  %v83_v11 = vsub.s32 3, %v70_v57 }
  0x3b   :  { %91 = vperm.xlu0 %2371, %v58_v26   ;;  %v311_v34 = vld [vmem:[#allocation5 + $0x1d8] sm:$0xff]  ;;  %v59_v37 = vld [vmem:[%s3087_s0 + $0x8] sm:$0xff]  ;;  %v2682_v39 = vpack.c.bf16 %v306_v30, %v302_v25  ;;  %v2684_v42 = vpack.c.bf16 %v313_v33, %v309_v31  ;;  %v308_v43 = vld [vmem:[#allocation5 + $0x1c0] sm:$0xff] }
  0x3c   :  { %1843 = vmatpush1.bf16.msra.mxu0 %v2648_v1  ;;  %v315_v35 = vld [vmem:[#allocation5 + $0x1f8] sm:$0xff]  ;;  %v312_v44 = vld [vmem:[#allocation5 + $0x1e0] sm:$0xff]  ;;  %v310_v47 = vld [vmem:[#allocation5 + $0x1d0] sm:$0xff] }
  0x3d   :  { %1875 = vmatpush1.bf16.msra.mxu1 %v2652_v2  ;;  %1845 = vmatprep.subr.bf16.mxu0 %v2654_v3  ;;  %v2687_v46 = vpack.c.bf16 %v315_v35, %v311_v34  ;;  %v314_v48 = vld [vmem:[#allocation5 + $0x1f0] sm:$0xff]  ;;  %v62_v49 = vld [vmem:[%s3087_s0 + $0x20] sm:$0xff]  ;;  %v2693_v50 = vpack.c.bf16 %v312_v44, %v308_v43 }
  0x3e   :  { %1877 = vmatprep.subr.bf16.mxu1 %v2657_v8  ;;  %v2697_v51 = vpack.c.bf16 %v314_v48, %v310_v47  ;;  %v64_v55 = vld [vmem:[%s3087_s0 + $0x30] sm:$0xff]  ;;  %v67_v60 = vld [vmem:[%s3088_s1] sm:$0xf] }
  0x3f   :  { %96 = vperm.xlu0 %2371, %v59_v37   ;;  %v2746_v63 = vrot.slane %v67_v60, %v71_v59  ;;  %v2748_v4 = vrot.slane %v67_v60, %v75_v61  ;;  %v66_v6 = vld [vmem:[%s3090_s3] sm:$0xf]  ;;  %v2753_v12 = vrot.slane %v67_v60, %v79_v62  ;;  %v2761_v24 = vrot.slane %v67_v60, %v83_v11 }
  0x40   :  { %1847 = vmatpush1.bf16.msra.mxu0 %v2660_v17  ;;  %v2755_v13 = vrot.slane %v66_v6, %v71_v59  ;;  %v2758_v16 = vrot.slane %v66_v6, %v75_v61  ;;  %v2764_v26 = vrot.slane %v66_v6, %v79_v62  ;;  %v2769_v44 = vrot.slane %v66_v6, %v83_v11 }
  0x41   :  { %1879 = vmatpush1.bf16.msra.mxu1 %v2664_v21  ;;  %1849 = vmatprep.subr.bf16.mxu0 %v2666_v22 }
  0x42   :  { %1881 = vmatprep.subr.bf16.mxu1 %v2672_v29 }
  0x43   :  { %111 = vperm.xlu0 %2371, %v62_v49  }
  0x44   :  { %1851 = vmatpush1.bf16.msra.mxu0 %v2678_v38 }
  0x45   :  { %1883 = vmatpush1.bf16.msra.mxu1 %v2682_v39  ;;  %1853 = vmatprep.subr.bf16.mxu0 %v2684_v42 }
  0x46   :  { %1885 = vmatprep.subr.bf16.mxu1 %v2687_v46 }
  0x47   :  { %121 = vperm.xlu0 %2371, %v64_v55  }
  0x48   :  { %1855 = vmatpush1.bf16.msra.mxu0 %v2693_v50 }
  0x49   :  { %1887 = vmatpush1.bf16.msra.mxu1 %v2697_v51  ;;  %1889 = vmatprep.subr.bf16.mxu0 %v2597_v5 }
  0x4a   :  { %1921 = vmatprep.subr.bf16.mxu1 %v2599_v9 }
  0x4b   :  { %381 = vmatmul.mubr.f32.vlgmr.msra.gmra.mrb[0].mxu0 %v2531_v0 }
  0x4c   :  { %452 = vmatmul.mubr.f32.vlgmr.msra.gmra.mrb[0].mxu1 %v2531_v0  ;;  %1891 = vmatpush1.bf16.msra.mxu0 %v2601_v10 }
  0x4d   :  { %1923 = vmatpush1.bf16.msra.mxu1 %v2604_v14  ;;  %1893 = vmatprep.subr.bf16.mxu0 %v2608_v18 }
  0x4e   :  { %1925 = vmatprep.subr.bf16.mxu1 %v2610_v19  ;;  %548 = vmatprep.mubr.f32.mxu0 %v2531_v0 }
  0x4f   :  { %619 = vmatprep.mubr.f32.mxu1 %v2531_v0 }
  0x50   :  { %1895 = vmatpush1.bf16.msra.mxu0 %v2613_v23 }
  0x51   :  { %1927 = vmatpush1.bf16.msra.mxu1 %v2617_v27  ;;  %1897 = vmatprep.subr.bf16.mxu0 %v2619_v28 }
  0x52   :  { %1929 = vmatprep.subr.bf16.mxu1 %v2621_v32 }
  0x54   :  { %1899 = vmatpush1.bf16.msra.mxu0 %v2624_v36 }
  0x55   :  { %1931 = vmatpush1.bf16.msra.mxu1 %v2628_v40  ;;  %1901 = vmatprep.subr.bf16.mxu0 %v2630_v41 }
  0x56   :  { %1933 = vmatprep.subr.bf16.mxu1 %v2633_v45 }
  0x58   :  { %1903 = vmatpush1.bf16.msra.mxu0 %v2636_v52 }
  0x59   :  { %1935 = vmatpush1.bf16.msra.mxu1 %v2640_v53  ;;  %1905 = vmatprep.subr.bf16.mxu0 %v2642_v54 }
  0x5a   :  { %1937 = vmatprep.subr.bf16.mxu1 %v2645_v58 }
  0x5c   :  { %1907 = vmatpush1.bf16.msra.mxu0 %v2648_v1 }
  0x5d   :  { %1939 = vmatpush1.bf16.msra.mxu1 %v2652_v2  ;;  %1909 = vmatprep.subr.bf16.mxu0 %v2654_v3 }
  0x5e   :  { %1941 = vmatprep.subr.bf16.mxu1 %v2657_v8 }
  0x60   :  { %1911 = vmatpush1.bf16.msra.mxu0 %v2660_v17 }
  0x61   :  { %1943 = vmatpush1.bf16.msra.mxu1 %v2664_v21  ;;  %1913 = vmatprep.subr.bf16.mxu0 %v2666_v22 }
  0x62   :  { %1945 = vmatprep.subr.bf16.mxu1 %v2672_v29 }
  0x64   :  { %1915 = vmatpush1.bf16.msra.mxu0 %v2678_v38 }
  0x65   :  { %1947 = vmatpush1.bf16.msra.mxu1 %v2682_v39  ;;  %1917 = vmatprep.subr.bf16.mxu0 %v2684_v42 }
  0x66   :  { %1949 = vmatprep.subr.bf16.mxu1 %v2687_v46 }
  0x68   :  { %1919 = vmatpush1.bf16.msra.mxu0 %v2693_v50 }
  0x69   :  { %1951 = vmatpush1.bf16.msra.mxu1 %v2697_v51  ;;  %1953 = vmatprep.subr.bf16.mxu0 %v2597_v5 }
  0x6a   :  { %1985 = vmatprep.subr.bf16.mxu1 %v2599_v9 }
  0xba   :  { %v92_v7 = vpop.permute.xlu0 %91 }
  0xbb   :  { %v150_v15 = vmul.f32 %v2746_v63, %v92_v7  ;;  %v151_v20 = vmul.f32 %v2748_v4, %v92_v7  ;;  %v152_v30 = vmul.f32 %v2753_v12, %v92_v7  ;;  %v153_v47 = vmul.f32 %v2761_v24, %v92_v7 }
  0xbd   :  { %v182_v25 = vadd.f32 %v150_v15, %v2755_v13  ;;  %v183_v31 = vadd.f32 %v151_v20, %v2758_v16  ;;  %v184_v35 = vadd.f32 %v152_v30, %v2764_v26  ;;  %v185_v59 = vadd.f32 %v153_v47, %v2769_v44 }
 0x11e   :  { %v382_v33 = vpop.f32.mrb[0].mxu0 }
 0x11f   :  { %v458_v34 = vadd.f32 %v382_v33, %v182_v25  ;;  %v453_v37 = vpop.f32.mrb[0].mxu1  ;;  %v384_v43 = vpop.f32.mrb[1].mxu0 }
 0x120   :  { %v459_v48 = vadd.f32 %v384_v43, %v183_v31  ;;  %v455_v49 = vpop.f32.mrb[1].mxu1  ;;  %v460_v57 = vadd.f32 %v453_v37, %v184_v35 }
 0x121   :  { %v462_v55 = vmul.f32 0.5, %v458_v34  ;;  %v461_v60 = vadd.f32 %v455_v49, %v185_v59  ;;  %v61_v49 = vld [vmem:[%s3087_s0 + $0x18] sm:$0xff] }
 0x122   :  { %v466_v56 = vmul.f32 0.5, %v459_v48  ;;  %v60_v48 = vld [vmem:[%s3087_s0 + $0x10] sm:$0xff] }
 0x123   :  { %2373 = vtanh.f32 %v462_v55  ;;  %v471_v61 = vmul.f32 0.5, %v461_v60  ;;  %101 = vperm.xlu1 %2372, %v60_v48   ;;  %v63_v55 = vld [vmem:[%s3087_s0 + $0x28] sm:$0xff] }
 0x124   :  { %2375 = vtanh.f32 %v466_v56  ;;  %v65_v56 = vld [vmem:[%s3087_s0 + $0x38] sm:$0xff] }
 0x125   :  { %2377 = vtanh.f32 %v460_v57  ;;  %v97_v57 = vpop.permute.xlu0 %96 }
 0x126   :  { %2379 = vtanh.f32 %v471_v61  ;;  %v154_v59 = vmul.f32 %v2746_v63, %v97_v57  ;;  %v155_v60 = vmul.f32 %v2748_v4, %v97_v57 }
 0x127   :  { %106 = vperm.xlu1 %2372, %v61_v49  }
 0x128   :  { %v186_v61 = vadd.f32 %v154_v59, %v2755_v13 }
 0x12b   :  { %116 = vperm.xlu1 %2372, %v63_v55  }
 0x12d   :  { %v2374_v62 = vpop.eup %2373 }
 0x12e   :  { %v2376_v15 = vpop.eup %2375  ;;  %v464_v20 = vmul.f32 0.5, %v2374_v62  ;;  %v156_v62 = vmul.f32 %v2753_v12, %v97_v57 }
 0x12f   :  { %v468_v25 = vmul.f32 0.5, %v2376_v15  ;;  %v2378_v11 = vpop.eup %2377  ;;  %126 = vperm.xlu1 %2372, %v65_v56  }
 0x130   :  { %v465_v6 = vadd.f32 0.5, %v464_v20  ;;  %v2380_v34 = vpop.eup %2379 }
 0x131   :  { %v469_v7 = vadd.f32 0.5, %v468_v25  ;;  %v473_v35 = vmul.f32 0.5, %v2380_v34  ;;  %v187_v25 = vadd.f32 %v155_v60, %v2758_v16  ;;  %v188_v34 = vadd.f32 %v156_v62, %v2764_v26 }
 0x132   :  { %v476_v30 = vmul.f32 %v2378_v11, %v465_v6 }
 0x133   :  { %v475_v31 = vmul.f32 0.0, %v469_v7  ;;  %v474_v37 = vadd.f32 0.5, %v473_v35  ;;  %v157_v35 = vmul.f32 %v2761_v24, %v97_v57 }
 0x135   :  { %v2773_v33 = vadd.f32 %v476_v30, %v475_v31 }
 0x137   :  { %2381 = vtanh.f32 %v2773_v33 }
 0x141   :  { %v2382_v43 = vpop.eup %2381 }
 0x142   :  { %v479_v47 = vmul.f32 %v2382_v43, %v474_v37 }
 0x144   :  { %549 = vmatmul.mubr.f32.vlgmr.msra.gmra.mrb[2].mxu0 %v479_v47  ;;  %620 = vmatmul.mubr.f32.vlgmr.msra.gmra.mrb[2].mxu1 %v479_v47  ;;  %v189_v47 = vadd.f32 %v157_v35, %v2769_v44 }
 0x145   :  { %1955 = vmatpush1.bf16.msra.mxu0 %v2601_v10  ;;  %1987 = vmatpush1.bf16.msra.mxu1 %v2604_v14 }
 0x146   :  { %1957 = vmatprep.subr.bf16.mxu0 %v2608_v18  ;;  %1989 = vmatprep.subr.bf16.mxu1 %v2610_v19 }
 0x147   :  { %716 = vmatprep.mubr.f32.mxu0 %v2531_v0  ;;  %787 = vmatprep.mubr.f32.mxu1 %v2531_v0 }
 0x149   :  { %1959 = vmatpush1.bf16.msra.mxu0 %v2613_v23  ;;  %1991 = vmatpush1.bf16.msra.mxu1 %v2617_v27 }
 0x14a   :  { %1961 = vmatprep.subr.bf16.mxu0 %v2619_v28  ;;  %1993 = vmatprep.subr.bf16.mxu1 %v2621_v32 }
 0x14d   :  { %1963 = vmatpush1.bf16.msra.mxu0 %v2624_v36  ;;  %1995 = vmatpush1.bf16.msra.mxu1 %v2628_v40 }
 0x14e   :  { %1965 = vmatprep.subr.bf16.mxu0 %v2630_v41  ;;  %1997 = vmatprep.subr.bf16.mxu1 %v2633_v45 }
 0x151   :  { %1967 = vmatpush1.bf16.msra.mxu0 %v2636_v52  ;;  %1999 = vmatpush1.bf16.msra.mxu1 %v2640_v53 }
 0x152   :  { %1969 = vmatprep.subr.bf16.mxu0 %v2642_v54  ;;  %2001 = vmatprep.subr.bf16.mxu1 %v2645_v58 }
 0x155   :  { %1971 = vmatpush1.bf16.msra.mxu0 %v2648_v1  ;;  %2003 = vmatpush1.bf16.msra.mxu1 %v2652_v2 }
 0x156   :  { %1973 = vmatprep.subr.bf16.mxu0 %v2654_v3  ;;  %2005 = vmatprep.subr.bf16.mxu1 %v2657_v8 }
 0x159   :  { %1975 = vmatpush1.bf16.msra.mxu0 %v2660_v17  ;;  %2007 = vmatpush1.bf16.msra.mxu1 %v2664_v21 }
 0x15a   :  { %1977 = vmatprep.subr.bf16.mxu0 %v2666_v22  ;;  %2009 = vmatprep.subr.bf16.mxu1 %v2672_v29 }
 0x15d   :  { %1979 = vmatpush1.bf16.msra.mxu0 %v2678_v38  ;;  %2011 = vmatpush1.bf16.msra.mxu1 %v2682_v39 }
 0x15e   :  { %1981 = vmatprep.subr.bf16.mxu0 %v2684_v42  ;;  %2013 = vmatprep.subr.bf16.mxu1 %v2687_v46 }
 0x161   :  { %1983 = vmatpush1.bf16.msra.mxu0 %v2693_v50  ;;  %2015 = vmatpush1.bf16.msra.mxu1 %v2697_v51 }
 0x162   :  { %2017 = vmatprep.subr.bf16.mxu0 %v2597_v5  ;;  %2049 = vmatprep.subr.bf16.mxu1 %v2599_v9 }
 0x217   :  { %v550_v15 = vpop.f32.mrb[2].mxu0  ;;  %v621_v20 = vpop.f32.mrb[2].mxu1 }
 0x218   :  { %v626_v6 = vadd.f32 %v550_v15, %v186_v61  ;;  %v552_v11 = vpop.f32.mrb[3].mxu0  ;;  %v623_v7 = vpop.f32.mrb[3].mxu1  ;;  %v628_v43 = vadd.f32 %v621_v20, %v188_v34 }
 0x219   :  { %v627_v30 = vadd.f32 %v552_v11, %v187_v25  ;;  %v629_v48 = vadd.f32 %v623_v7, %v189_v47 }
 0x21a   :  { %v630_v31 = vmul.f32 0.5, %v626_v6 }
 0x21b   :  { %v634_v37 = vmul.f32 0.5, %v627_v30  ;;  %v639_v49 = vmul.f32 0.5, %v629_v48 }
 0x21c   :  { %2383 = vtanh.f32 %v630_v31 }
 0x21d   :  { %2385 = vtanh.f32 %v634_v37 }
 0x21e   :  { %2387 = vtanh.f32 %v628_v43 }
 0x21f   :  { %2389 = vtanh.f32 %v639_v49 }
 0x226   :  { %v2384_v55 = vpop.eup %2383 }
 0x227   :  { %v2386_v56 = vpop.eup %2385  ;;  %v632_v59 = vmul.f32 0.5, %v2384_v55 }
 0x228   :  { %v636_v60 = vmul.f32 0.5, %v2386_v56  ;;  %v2388_v15 = vpop.eup %2387 }
 0x229   :  { %v633_v61 = vadd.f32 0.5, %v632_v59  ;;  %v2390_v20 = vpop.eup %2389 }
 0x22a   :  { %v637_v25 = vadd.f32 0.5, %v636_v60  ;;  %v641_v11 = vmul.f32 0.5, %v2390_v20 }
 0x22b   :  { %v644_v62 = vmul.f32 %v2388_v15, %v633_v61 }
 0x22c   :  { %v643_v57 = vmul.f32 %v637_v25, %v2773_v33  ;;  %v642_v30 = vadd.f32 0.5, %v641_v11  ;;  %v102_v33 = vpop.permute.xlu1 %101 }
 0x22d   :  { %v158_v34 = vmul.f32 %v2746_v63, %v102_v33  ;;  %v159_v35 = vmul.f32 %v2748_v4, %v102_v33  ;;  %v160_v43 = vmul.f32 %v2753_v12, %v102_v33  ;;  %v161_v60 = vmul.f32 %v2761_v24, %v102_v33 }
 0x22e   :  { %v2831_v6 = vadd.f32 %v644_v62, %v643_v57 }
 0x22f   :  { %v190_v37 = vadd.f32 %v158_v34, %v2755_v13  ;;  %v191_v47 = vadd.f32 %v159_v35, %v2758_v16  ;;  %v192_v56 = vadd.f32 %v160_v43, %v2764_v26  ;;  %v193_v20 = vadd.f32 %v161_v60, %v2769_v44 }
 0x230   :  { %2391 = vtanh.f32 %v2831_v6 }
 0x23a   :  { %v2392_v7 = vpop.eup %2391 }
 0x23b   :  { %v647_v31 = vmul.f32 %v2392_v7, %v642_v30 }
 0x23d   :  { %717 = vmatmul.mubr.f32.vlgmr.msra.gmra.mrb[4].mxu0 %v647_v31  ;;  %788 = vmatmul.mubr.f32.vlgmr.msra.gmra.mrb[4].mxu1 %v647_v31 }
 0x23e   :  { %2019 = vmatpush1.bf16.msra.mxu0 %v2601_v10  ;;  %2051 = vmatpush1.bf16.msra.mxu1 %v2604_v14 }
 0x23f   :  { %2021 = vmatprep.subr.bf16.mxu0 %v2608_v18  ;;  %2053 = vmatprep.subr.bf16.mxu1 %v2610_v19 }
 0x240   :  { %884 = vmatprep.mubr.f32.mxu0 %v2531_v0  ;;  %955 = vmatprep.mubr.f32.mxu1 %v2531_v0 }
 0x242   :  { %2023 = vmatpush1.bf16.msra.mxu0 %v2613_v23  ;;  %2055 = vmatpush1.bf16.msra.mxu1 %v2617_v27 }
 0x243   :  { %2025 = vmatprep.subr.bf16.mxu0 %v2619_v28  ;;  %2057 = vmatprep.subr.bf16.mxu1 %v2621_v32 }
 0x246   :  { %2027 = vmatpush1.bf16.msra.mxu0 %v2624_v36  ;;  %2059 = vmatpush1.bf16.msra.mxu1 %v2628_v40 }
 0x247   :  { %2029 = vmatprep.subr.bf16.mxu0 %v2630_v41  ;;  %2061 = vmatprep.subr.bf16.mxu1 %v2633_v45 }
 0x24a   :  { %2031 = vmatpush1.bf16.msra.mxu0 %v2636_v52  ;;  %2063 = vmatpush1.bf16.msra.mxu1 %v2640_v53 }
 0x24b   :  { %2033 = vmatprep.subr.bf16.mxu0 %v2642_v54  ;;  %2065 = vmatprep.subr.bf16.mxu1 %v2645_v58 }
 0x24e   :  { %2035 = vmatpush1.bf16.msra.mxu0 %v2648_v1  ;;  %2067 = vmatpush1.bf16.msra.mxu1 %v2652_v2 }
 0x24f   :  { %2037 = vmatprep.subr.bf16.mxu0 %v2654_v3  ;;  %2069 = vmatprep.subr.bf16.mxu1 %v2657_v8 }
 0x252   :  { %2039 = vmatpush1.bf16.msra.mxu0 %v2660_v17  ;;  %2071 = vmatpush1.bf16.msra.mxu1 %v2664_v21 }
 0x253   :  { %2041 = vmatprep.subr.bf16.mxu0 %v2666_v22  ;;  %2073 = vmatprep.subr.bf16.mxu1 %v2672_v29 }
 0x256   :  { %2043 = vmatpush1.bf16.msra.mxu0 %v2678_v38  ;;  %2075 = vmatpush1.bf16.msra.mxu1 %v2682_v39 }
 0x257   :  { %2045 = vmatprep.subr.bf16.mxu0 %v2684_v42  ;;  %2077 = vmatprep.subr.bf16.mxu1 %v2687_v46 }
 0x25a   :  { %2047 = vmatpush1.bf16.msra.mxu0 %v2693_v50  ;;  %2079 = vmatpush1.bf16.msra.mxu1 %v2697_v51 }
 0x25b   :  { %2081 = vmatprep.subr.bf16.mxu0 %v2597_v5  ;;  %2113 = vmatprep.subr.bf16.mxu1 %v2599_v9 }
 0x310   :  { %v718_v48 = vpop.f32.mrb[4].mxu0  ;;  %v789_v49 = vpop.f32.mrb[4].mxu1 }
 0x311   :  { %v794_v55 = vadd.f32 %v718_v48, %v190_v37  ;;  %v720_v59 = vpop.f32.mrb[5].mxu0  ;;  %v791_v61 = vpop.f32.mrb[5].mxu1  ;;  %v796_v57 = vadd.f32 %v789_v49, %v192_v56 }
 0x312   :  { %v795_v15 = vadd.f32 %v720_v59, %v191_v47  ;;  %v797_v11 = vadd.f32 %v791_v61, %v193_v20 }
 0x313   :  { %v798_v25 = vmul.f32 0.5, %v794_v55 }
 0x314   :  { %v802_v62 = vmul.f32 0.5, %v795_v15  ;;  %v807_v30 = vmul.f32 0.5, %v797_v11 }
 0x315   :  { %2393 = vtanh.f32 %v798_v25 }
 0x316   :  { %2395 = vtanh.f32 %v802_v62 }
 0x317   :  { %2397 = vtanh.f32 %v796_v57 }
 0x318   :  { %2399 = vtanh.f32 %v807_v30 }
 0x31f   :  { %v2394_v7 = vpop.eup %2393 }
 0x320   :  { %v2396_v31 = vpop.eup %2395  ;;  %v800_v34 = vmul.f32 0.5, %v2394_v7 }
 0x321   :  { %v804_v35 = vmul.f32 0.5, %v2396_v31  ;;  %v2398_v43 = vpop.eup %2397 }
 0x322   :  { %v801_v37 = vadd.f32 0.5, %v800_v34  ;;  %v2400_v49 = vpop.eup %2399 }
 0x323   :  { %v805_v33 = vadd.f32 0.5, %v804_v35  ;;  %v809_v56 = vmul.f32 0.5, %v2400_v49 }
 0x324   :  { %v812_v48 = vmul.f32 %v2398_v43, %v801_v37 }
 0x325   :  { %v811_v47 = vmul.f32 %v805_v33, %v2831_v6  ;;  %v810_v59 = vadd.f32 0.5, %v809_v56  ;;  %v107_v6 = vpop.permute.xlu1 %106 }
 0x326   :  { %v162_v15 = vmul.f32 %v2746_v63, %v107_v6  ;;  %v163_v25 = vmul.f32 %v2748_v4, %v107_v6  ;;  %v164_v57 = vmul.f32 %v2753_v12, %v107_v6  ;;  %v165_v33 = vmul.f32 %v2761_v24, %v107_v6 }
 0x327   :  { %v2877_v55 = vadd.f32 %v812_v48, %v811_v47 }
 0x328   :  { %v194_v62 = vadd.f32 %v162_v15, %v2755_v13  ;;  %v195_v30 = vadd.f32 %v163_v25, %v2758_v16  ;;  %v196_v43 = vadd.f32 %v164_v57, %v2764_v26  ;;  %v197_v49 = vadd.f32 %v165_v33, %v2769_v44 }
 0x329   :  { %2401 = vtanh.f32 %v2877_v55 }
 0x333   :  { %v2402_v60 = vpop.eup %2401 }
 0x334   :  { %v815_v61 = vmul.f32 %v2402_v60, %v810_v59 }
 0x336   :  { %885 = vmatmul.mubr.f32.vlgmr.msra.gmra.mrb[6].mxu0 %v815_v61  ;;  %956 = vmatmul.mubr.f32.vlgmr.msra.gmra.mrb[6].mxu1 %v815_v61 }
 0x337   :  { %2083 = vmatpush1.bf16.msra.mxu0 %v2601_v10  ;;  %2115 = vmatpush1.bf16.msra.mxu1 %v2604_v14 }
 0x338   :  { %2085 = vmatprep.subr.bf16.mxu0 %v2608_v18  ;;  %2117 = vmatprep.subr.bf16.mxu1 %v2610_v19 }
 0x339   :  { %1052 = vmatprep.mubr.f32.mxu0 %v2531_v0  ;;  %1123 = vmatprep.mubr.f32.mxu1 %v2531_v0 }
 0x33b   :  { %2087 = vmatpush1.bf16.msra.mxu0 %v2613_v23  ;;  %2119 = vmatpush1.bf16.msra.mxu1 %v2617_v27 }
 0x33c   :  { %2089 = vmatprep.subr.bf16.mxu0 %v2619_v28  ;;  %2121 = vmatprep.subr.bf16.mxu1 %v2621_v32 }
 0x33f   :  { %2091 = vmatpush1.bf16.msra.mxu0 %v2624_v36  ;;  %2123 = vmatpush1.bf16.msra.mxu1 %v2628_v40 }
 0x340   :  { %2093 = vmatprep.subr.bf16.mxu0 %v2630_v41  ;;  %2125 = vmatprep.subr.bf16.mxu1 %v2633_v45 }
 0x343   :  { %2095 = vmatpush1.bf16.msra.mxu0 %v2636_v52  ;;  %2127 = vmatpush1.bf16.msra.mxu1 %v2640_v53 }
 0x344   :  { %2097 = vmatprep.subr.bf16.mxu0 %v2642_v54  ;;  %2129 = vmatprep.subr.bf16.mxu1 %v2645_v58 }
 0x347   :  { %2099 = vmatpush1.bf16.msra.mxu0 %v2648_v1  ;;  %2131 = vmatpush1.bf16.msra.mxu1 %v2652_v2 }
 0x348   :  { %2101 = vmatprep.subr.bf16.mxu0 %v2654_v3  ;;  %2133 = vmatprep.subr.bf16.mxu1 %v2657_v8 }
 0x34b   :  { %2103 = vmatpush1.bf16.msra.mxu0 %v2660_v17  ;;  %2135 = vmatpush1.bf16.msra.mxu1 %v2664_v21 }
 0x34c   :  { %2105 = vmatprep.subr.bf16.mxu0 %v2666_v22  ;;  %2137 = vmatprep.subr.bf16.mxu1 %v2672_v29 }
 0x34f   :  { %2107 = vmatpush1.bf16.msra.mxu0 %v2678_v38  ;;  %2139 = vmatpush1.bf16.msra.mxu1 %v2682_v39 }
 0x350   :  { %2109 = vmatprep.subr.bf16.mxu0 %v2684_v42  ;;  %2141 = vmatprep.subr.bf16.mxu1 %v2687_v46 }
 0x353   :  { %2111 = vmatpush1.bf16.msra.mxu0 %v2693_v50  ;;  %2143 = vmatpush1.bf16.msra.mxu1 %v2697_v51 }
 0x354   :  { %2145 = vmatprep.subr.bf16.mxu0 %v2597_v5  ;;  %2177 = vmatprep.subr.bf16.mxu1 %v2599_v9 }
 0x409   :  { %v886_v20 = vpop.f32.mrb[6].mxu0  ;;  %v957_v11 = vpop.f32.mrb[6].mxu1 }
 0x40a   :  { %v962_v7 = vadd.f32 %v886_v20, %v194_v62  ;;  %v888_v31 = vpop.f32.mrb[7].mxu0  ;;  %v959_v34 = vpop.f32.mrb[7].mxu1  ;;  %v964_v47 = vadd.f32 %v957_v11, %v196_v43 }
 0x40b   :  { %v963_v35 = vadd.f32 %v888_v31, %v195_v30  ;;  %v965_v56 = vadd.f32 %v959_v34, %v197_v49 }
 0x40c   :  { %v966_v37 = vmul.f32 0.5, %v962_v7 }
 0x40d   :  { %v970_v48 = vmul.f32 0.5, %v963_v35  ;;  %v975_v59 = vmul.f32 0.5, %v965_v56 }
 0x40e   :  { %2403 = vtanh.f32 %v966_v37 }
 0x40f   :  { %2405 = vtanh.f32 %v970_v48 }
 0x410   :  { %2407 = vtanh.f32 %v964_v47 }
 0x411   :  { %2409 = vtanh.f32 %v975_v59 }
 0x418   :  { %v2404_v60 = vpop.eup %2403 }
 0x419   :  { %v2406_v61 = vpop.eup %2405  ;;  %v968_v15 = vmul.f32 0.5, %v2404_v60 }
 0x41a   :  { %v972_v25 = vmul.f32 0.5, %v2406_v61  ;;  %v2408_v20 = vpop.eup %2407 }
 0x41b   :  { %v969_v62 = vadd.f32 0.5, %v968_v15  ;;  %v2410_v11 = vpop.eup %2409 }
 0x41c   :  { %v973_v30 = vadd.f32 0.5, %v972_v25  ;;  %v977_v31 = vmul.f32 0.5, %v2410_v11 }
 0x41d   :  { %v980_v57 = vmul.f32 %v2408_v20, %v969_v62 }
 0x41e   :  { %v979_v6 = vmul.f32 %v973_v30, %v2877_v55  ;;  %v978_v35 = vadd.f32 0.5, %v977_v31  ;;  %v112_v55 = vpop.permute.xlu0 %111 }
 0x41f   :  { %v166_v43 = vmul.f32 %v2746_v63, %v112_v55  ;;  %v167_v33 = vmul.f32 %v2748_v4, %v112_v55  ;;  %v168_v47 = vmul.f32 %v2753_v12, %v112_v55  ;;  %v169_v30 = vmul.f32 %v2761_v24, %v112_v55 }
 0x420   :  { %v2923_v7 = vadd.f32 %v980_v57, %v979_v6 }
 0x421   :  { %v198_v48 = vadd.f32 %v166_v43, %v2755_v13  ;;  %v199_v59 = vadd.f32 %v167_v33, %v2758_v16  ;;  %v200_v20 = vadd.f32 %v168_v47, %v2764_v26  ;;  %v201_v11 = vadd.f32 %v169_v30, %v2769_v44 }
 0x422   :  { %2411 = vtanh.f32 %v2923_v7 }
 0x42c   :  { %v2412_v34 = vpop.eup %2411 }
 0x42d   :  { %v983_v37 = vmul.f32 %v2412_v34, %v978_v35 }
 0x42f   :  { %1053 = vmatmul.mubr.f32.vlgmr.msra.gmra.mrb[8].mxu0 %v983_v37  ;;  %1124 = vmatmul.mubr.f32.vlgmr.msra.gmra.mrb[8].mxu1 %v983_v37 }
 0x430   :  { %2147 = vmatpush1.bf16.msra.mxu0 %v2601_v10  ;;  %2179 = vmatpush1.bf16.msra.mxu1 %v2604_v14 }
 0x431   :  { %2149 = vmatprep.subr.bf16.mxu0 %v2608_v18  ;;  %2181 = vmatprep.subr.bf16.mxu1 %v2610_v19 }
 0x432   :  { %1220 = vmatprep.mubr.f32.mxu0 %v2531_v0  ;;  %1291 = vmatprep.mubr.f32.mxu1 %v2531_v0 }
 0x434   :  { %2151 = vmatpush1.bf16.msra.mxu0 %v2613_v23  ;;  %2183 = vmatpush1.bf16.msra.mxu1 %v2617_v27 }
 0x435   :  { %2153 = vmatprep.subr.bf16.mxu0 %v2619_v28  ;;  %2185 = vmatprep.subr.bf16.mxu1 %v2621_v32 }
 0x438   :  { %2155 = vmatpush1.bf16.msra.mxu0 %v2624_v36  ;;  %2187 = vmatpush1.bf16.msra.mxu1 %v2628_v40 }
 0x439   :  { %2157 = vmatprep.subr.bf16.mxu0 %v2630_v41  ;;  %2189 = vmatprep.subr.bf16.mxu1 %v2633_v45 }
 0x43c   :  { %2159 = vmatpush1.bf16.msra.mxu0 %v2636_v52  ;;  %2191 = vmatpush1.bf16.msra.mxu1 %v2640_v53 }
 0x43d   :  { %2161 = vmatprep.subr.bf16.mxu0 %v2642_v54  ;;  %2193 = vmatprep.subr.bf16.mxu1 %v2645_v58 }
 0x440   :  { %2163 = vmatpush1.bf16.msra.mxu0 %v2648_v1  ;;  %2195 = vmatpush1.bf16.msra.mxu1 %v2652_v2 }
 0x441   :  { %2165 = vmatprep.subr.bf16.mxu0 %v2654_v3  ;;  %2197 = vmatprep.subr.bf16.mxu1 %v2657_v8 }
 0x444   :  { %2167 = vmatpush1.bf16.msra.mxu0 %v2660_v17  ;;  %2199 = vmatpush1.bf16.msra.mxu1 %v2664_v21 }
 0x445   :  { %2169 = vmatprep.subr.bf16.mxu0 %v2666_v22  ;;  %2201 = vmatprep.subr.bf16.mxu1 %v2672_v29 }
 0x448   :  { %2171 = vmatpush1.bf16.msra.mxu0 %v2678_v38  ;;  %2203 = vmatpush1.bf16.msra.mxu1 %v2682_v39 }
 0x449   :  { %2173 = vmatprep.subr.bf16.mxu0 %v2684_v42  ;;  %2205 = vmatprep.subr.bf16.mxu1 %v2687_v46 }
 0x44c   :  { %2175 = vmatpush1.bf16.msra.mxu0 %v2693_v50  ;;  %2207 = vmatpush1.bf16.msra.mxu1 %v2697_v51 }
 0x44d   :  { %2209 = vmatprep.subr.bf16.mxu0 %v2597_v5  ;;  %2241 = vmatprep.subr.bf16.mxu1 %v2599_v9 }
 0x502   :  { %v1054_v49 = vpop.f32.mrb[8].mxu0  ;;  %v1125_v56 = vpop.f32.mrb[8].mxu1 }
 0x503   :  { %v1130_v60 = vadd.f32 %v1054_v49, %v198_v48  ;;  %v1056_v61 = vpop.f32.mrb[9].mxu0  ;;  %v1127_v15 = vpop.f32.mrb[9].mxu1  ;;  %v1132_v6 = vadd.f32 %v1125_v56, %v200_v20 }
 0x504   :  { %v1131_v25 = vadd.f32 %v1056_v61, %v199_v59  ;;  %v1133_v31 = vadd.f32 %v1127_v15, %v201_v11 }
 0x505   :  { %v1134_v62 = vmul.f32 0.5, %v1130_v60 }
 0x506   :  { %v1138_v57 = vmul.f32 0.5, %v1131_v25  ;;  %v1143_v35 = vmul.f32 0.5, %v1133_v31 }
 0x507   :  { %2413 = vtanh.f32 %v1134_v62 }
 0x508   :  { %2415 = vtanh.f32 %v1138_v57 }
 0x509   :  { %2417 = vtanh.f32 %v1132_v6 }
 0x50a   :  { %2419 = vtanh.f32 %v1143_v35 }
 0x511   :  { %v2414_v34 = vpop.eup %2413 }
 0x512   :  { %v2416_v37 = vpop.eup %2415  ;;  %v1136_v43 = vmul.f32 0.5, %v2414_v34 }
 0x513   :  { %v1140_v33 = vmul.f32 0.5, %v2416_v37  ;;  %v2418_v49 = vpop.eup %2417 }
 0x514   :  { %v1137_v48 = vadd.f32 0.5, %v1136_v43  ;;  %v2420_v56 = vpop.eup %2419 }
 0x515   :  { %v1141_v59 = vadd.f32 0.5, %v1140_v33  ;;  %v1145_v61 = vmul.f32 0.5, %v2420_v56 }
 0x516   :  { %v1148_v47 = vmul.f32 %v2418_v49, %v1137_v48 }
 0x517   :  { %v1147_v55 = vmul.f32 %v1141_v59, %v2923_v7  ;;  %v1146_v25 = vadd.f32 0.5, %v1145_v61  ;;  %v117_v7 = vpop.permute.xlu1 %116 }
 0x518   :  { %v170_v20 = vmul.f32 %v2746_v63, %v117_v7  ;;  %v171_v30 = vmul.f32 %v2748_v4, %v117_v7  ;;  %v172_v6 = vmul.f32 %v2753_v12, %v117_v7  ;;  %v173_v48 = vmul.f32 %v2761_v24, %v117_v7 }
 0x519   :  { %v2969_v60 = vadd.f32 %v1148_v47, %v1147_v55 }
 0x51a   :  { %v202_v57 = vadd.f32 %v170_v20, %v2755_v13  ;;  %v203_v35 = vadd.f32 %v171_v30, %v2758_v16  ;;  %v205_v47 = vadd.f32 %v173_v48, %v2769_v44 }
 0x51b   :  { %2421 = vtanh.f32 %v2969_v60 }
 0x525   :  { %v2422_v15 = vpop.eup %2421 }
 0x526   :  { %v1151_v62 = vmul.f32 %v2422_v15, %v1146_v25 }
 0x528   :  { %1221 = vmatmul.mubr.f32.vlgmr.msra.gmra.mrb[10].mxu0 %v1151_v62  ;;  %1292 = vmatmul.mubr.f32.vlgmr.msra.gmra.mrb[10].mxu1 %v1151_v62 }
 0x529   :  { %2211 = vmatpush1.bf16.msra.mxu0 %v2601_v10  ;;  %2243 = vmatpush1.bf16.msra.mxu1 %v2604_v14 }
 0x52a   :  { %2213 = vmatprep.subr.bf16.mxu0 %v2608_v18  ;;  %2245 = vmatprep.subr.bf16.mxu1 %v2610_v19 }
 0x52b   :  { %1388 = vmatprep.mubr.f32.mxu0 %v2531_v0  ;;  %1459 = vmatprep.mubr.f32.mxu1 %v2531_v0 }
 0x52d   :  { %2215 = vmatpush1.bf16.msra.mxu0 %v2613_v23  ;;  %2247 = vmatpush1.bf16.msra.mxu1 %v2617_v27 }
 0x52e   :  { %2217 = vmatprep.subr.bf16.mxu0 %v2619_v28  ;;  %2249 = vmatprep.subr.bf16.mxu1 %v2621_v32 }
 0x531   :  { %2219 = vmatpush1.bf16.msra.mxu0 %v2624_v36  ;;  %2251 = vmatpush1.bf16.msra.mxu1 %v2628_v40 }
 0x532   :  { %2221 = vmatprep.subr.bf16.mxu0 %v2630_v41  ;;  %2253 = vmatprep.subr.bf16.mxu1 %v2633_v45 }
 0x535   :  { %2223 = vmatpush1.bf16.msra.mxu0 %v2636_v52  ;;  %2255 = vmatpush1.bf16.msra.mxu1 %v2640_v53 }
 0x536   :  { %2225 = vmatprep.subr.bf16.mxu0 %v2642_v54  ;;  %2257 = vmatprep.subr.bf16.mxu1 %v2645_v58 }
 0x539   :  { %2227 = vmatpush1.bf16.msra.mxu0 %v2648_v1  ;;  %2259 = vmatpush1.bf16.msra.mxu1 %v2652_v2 }
 0x53a   :  { %2229 = vmatprep.subr.bf16.mxu0 %v2654_v3  ;;  %2261 = vmatprep.subr.bf16.mxu1 %v2657_v8 }
 0x53d   :  { %2231 = vmatpush1.bf16.msra.mxu0 %v2660_v17  ;;  %2263 = vmatpush1.bf16.msra.mxu1 %v2664_v21 }
 0x53e   :  { %2233 = vmatprep.subr.bf16.mxu0 %v2666_v22  ;;  %2265 = vmatprep.subr.bf16.mxu1 %v2672_v29 }
 0x541   :  { %2235 = vmatpush1.bf16.msra.mxu0 %v2678_v38  ;;  %2267 = vmatpush1.bf16.msra.mxu1 %v2682_v39 }
 0x542   :  { %2237 = vmatprep.subr.bf16.mxu0 %v2684_v42  ;;  %2269 = vmatprep.subr.bf16.mxu1 %v2687_v46 }
 0x545   :  { %2239 = vmatpush1.bf16.msra.mxu0 %v2693_v50  ;;  %2271 = vmatpush1.bf16.msra.mxu1 %v2697_v51 }
 0x546   :  { %2273 = vmatprep.subr.bf16.mxu0 %v2597_v5  ;;  %2305 = vmatprep.subr.bf16.mxu1 %v2599_v9  ;;  %v204_v9 = vadd.f32 %v172_v6, %v2764_v26 }
 0x5fb   :  { %v1222_v11 = vpop.f32.mrb[10].mxu0  ;;  %v1293_v31 = vpop.f32.mrb[10].mxu1 }
 0x5fc   :  { %v1298_v34 = vadd.f32 %v1222_v11, %v202_v57  ;;  %v1224_v37 = vpop.f32.mrb[11].mxu0  ;;  %v1295_v43 = vpop.f32.mrb[11].mxu1  ;;  %v1300_v59 = vadd.f32 %v1293_v31, %v204_v9 }
 0x5fd   :  { %v1299_v33 = vadd.f32 %v1224_v37, %v203_v35  ;;  %v1301_v55 = vadd.f32 %v1295_v43, %v205_v47 }
 0x5fe   :  { %v1302_v5 = vmul.f32 0.5, %v1298_v34 }
 0x5ff   :  { %v1306_v49 = vmul.f32 0.5, %v1299_v33  ;;  %v1311_v56 = vmul.f32 0.5, %v1301_v55  ;;  %v2533_v55 = vmov 0.0|0.0  }
 0x600   :  { %2423 = vtanh.f32 %v1302_v5 }
 0x601   :  { %2425 = vtanh.f32 %v1306_v49  ;;  %v1661_v49 = vld [vmem:[#allocation8] sm:$0xff] }
 0x602   :  { %2427 = vtanh.f32 %v1300_v59  ;;  %v1662_v59 = vld [vmem:[#allocation8 + $0x8] sm:$0xff] }
 0x603   :  { %2429 = vtanh.f32 %v1311_v56  ;;  %v2337_v47 = vpack.c.bf16 %v1662_v59, %v1661_v49  ;;  %v1663_v56 = vld [vmem:[#allocation8 + $0x10] sm:$0xff] }
 0x60a   :  { %v2424_v61 = vpop.eup %2423 }
 0x60b   :  { %v2426_v25 = vpop.eup %2425  ;;  %v1304_v15 = vmul.f32 0.5, %v2424_v61  ;;  %v1664_v61 = vld [vmem:[#allocation8 + $0x18] sm:$0xff] }
 0x60c   :  { %v1308_v62 = vmul.f32 0.5, %v2426_v25  ;;  %v2428_v30 = vpop.eup %2427  ;;  %v2340_v25 = vpack.c.bf16 %v1664_v61, %v1663_v56 }
 0x60d   :  { %v1305_v20 = vadd.f32 0.5, %v1304_v15  ;;  %v2430_v31 = vpop.eup %2429  ;;  %v1665_v15 = vld [vmem:[#allocation8 + $0x20] sm:$0xff] }
 0x60e   :  { %v1309_v57 = vadd.f32 0.5, %v1308_v62  ;;  %v1313_v35 = vmul.f32 0.5, %v2430_v31  ;;  %v1666_v62 = vld [vmem:[#allocation8 + $0x28] sm:$0xff] }
 0x60f   :  { %v1316_v6 = vmul.f32 %v2428_v30, %v1305_v20  ;;  %v2343_v20 = vpack.c.bf16 %v1666_v62, %v1665_v15  ;;  %v1667_v30 = vld [vmem:[#allocation8 + $0x30] sm:$0xff] }
 0x610   :  { %v1315_v7 = vmul.f32 %v1309_v57, %v2969_v60  ;;  %v1314_v34 = vadd.f32 0.5, %v1313_v35  ;;  %v1668_v57 = vld [vmem:[#allocation8 + $0x38] sm:$0xff]  ;;  %v1671_v35 = vld [vmem:[#allocation8 + $0x50] sm:$0xff] }
 0x612   :  { %v3015_v11 = vadd.f32 %v1316_v6, %v1315_v7  ;;  %v2346_v6 = vpack.c.bf16 %v1668_v57, %v1667_v30  ;;  %v1669_v7 = vld [vmem:[#allocation8 + $0x40] sm:$0xff] }
 0x614   :  { %2431 = vtanh.f32 %v3015_v11 }
 0x61e   :  { %v2432_v37 = vpop.eup %2431 }
 0x61f   :  { %v1319_v43 = vmul.f32 %v2432_v37, %v1314_v34  ;;  %v1672_v34 = vld [vmem:[#allocation8 + $0x58] sm:$0xff] }
 0x620   :  { %v2352_v37 = vpack.c.bf16 %v1672_v34, %v1671_v35 }
 0x621   :  { %1389 = vmatmul.mubr.f32.vlgmr.msra.gmra.mrb[12].mxu0 %v1319_v43  ;;  %1460 = vmatmul.mubr.f32.vlgmr.msra.gmra.mrb[12].mxu1 %v1319_v43  ;;  %v1673_v43 = vld [vmem:[#allocation8 + $0x60] sm:$0xff] }
 0x622   :  { %2275 = vmatpush1.bf16.msra.mxu0 %v2601_v10  ;;  %2307 = vmatpush1.bf16.msra.mxu1 %v2604_v14  ;;  %v122_v10 = vpop.permute.xlu0 %121 }
 0x623   :  { %2277 = vmatprep.subr.bf16.mxu0 %v2608_v18  ;;  %2309 = vmatprep.subr.bf16.mxu1 %v2610_v19  ;;  %v174_v14 = vmul.f32 %v2746_v63, %v122_v10  ;;  %v175_v18 = vmul.f32 %v2748_v4, %v122_v10  ;;  %v176_v19 = vmul.f32 %v2753_v12, %v122_v10 }
 0x624   :  { %1556 = vmatprep.mubr.f32.mxu0 %v2531_v0  ;;  %1627 = vmatprep.mubr.f32.mxu1 %v2531_v0 }
 0x626   :  { %2279 = vmatpush1.bf16.msra.mxu0 %v2613_v23  ;;  %2311 = vmatpush1.bf16.msra.mxu1 %v2617_v27  ;;  %v206_v23 = vadd.f32 %v174_v14, %v2755_v13 }
 0x627   :  { %2281 = vmatprep.subr.bf16.mxu0 %v2619_v28  ;;  %2313 = vmatprep.subr.bf16.mxu1 %v2621_v32  ;;  %v207_v32 = vadd.f32 %v175_v18, %v2758_v16  ;;  %v1675_v18 = vld [vmem:[#allocation8 + $0x70] sm:$0xff] }
 0x62a   :  { %2283 = vmatpush1.bf16.msra.mxu0 %v2624_v36  ;;  %2315 = vmatpush1.bf16.msra.mxu1 %v2628_v40 }
 0x62b   :  { %2285 = vmatprep.subr.bf16.mxu0 %v2630_v41  ;;  %2317 = vmatprep.subr.bf16.mxu1 %v2633_v45 }
 0x62e   :  { %2287 = vmatpush1.bf16.msra.mxu0 %v2636_v52  ;;  %2319 = vmatpush1.bf16.msra.mxu1 %v2640_v53  ;;  %v177_v52 = vmul.f32 %v2761_v24, %v122_v10  ;;  %v1674_v10 = vld [vmem:[#allocation8 + $0x68] sm:$0xff] }
 0x62f   :  { %2289 = vmatprep.subr.bf16.mxu0 %v2642_v54  ;;  %2321 = vmatprep.subr.bf16.mxu1 %v2645_v58  ;;  %v208_v54 = vadd.f32 %v176_v19, %v2764_v26  ;;  %v2355_v14 = vpack.c.bf16 %v1674_v10, %v1673_v43  ;;  %v1676_v19 = vld [vmem:[#allocation8 + $0x78] sm:$0xff] }
 0x632   :  { %2291 = vmatpush1.bf16.msra.mxu0 %v2648_v1  ;;  %2323 = vmatpush1.bf16.msra.mxu1 %v2652_v2  ;;  %v209_v2 = vadd.f32 %v177_v52, %v2769_v44 }
 0x633   :  { %2293 = vmatprep.subr.bf16.mxu0 %v2654_v3  ;;  %2325 = vmatprep.subr.bf16.mxu1 %v2657_v8 }
 0x636   :  { %2295 = vmatpush1.bf16.msra.mxu0 %v2660_v17  ;;  %2327 = vmatpush1.bf16.msra.mxu1 %v2664_v21 }
 0x637   :  { %2297 = vmatprep.subr.bf16.mxu0 %v2666_v22  ;;  %2329 = vmatprep.subr.bf16.mxu1 %v2672_v29 }
 0x63a   :  { %2299 = vmatpush1.bf16.msra.mxu0 %v2678_v38  ;;  %2331 = vmatpush1.bf16.msra.mxu1 %v2682_v39 }
 0x63b   :  { %2301 = vmatprep.subr.bf16.mxu0 %v2684_v42  ;;  %2333 = vmatprep.subr.bf16.mxu1 %v2687_v46 }
 0x63e   :  { %2303 = vmatpush1.bf16.msra.mxu0 %v2693_v50  ;;  %2335 = vmatpush1.bf16.msra.mxu1 %v2697_v51 }
 0x63f   :  { %2336 = vmatprep.subr.bf16.mxu0 %v2533_v55 }
 0x6f4   :  { %v1390_v27 = vpop.f32.mrb[12].mxu0  ;;  %v1461_v28 = vpop.f32.mrb[12].mxu1 }
 0x6f5   :  { %v1466_v36 = vadd.f32 %v1390_v27, %v206_v23  ;;  %v1392_v40 = vpop.f32.mrb[13].mxu0  ;;  %v1463_v41 = vpop.f32.mrb[13].mxu1  ;;  %v1468_v1 = vadd.f32 %v1461_v28, %v208_v54  ;;  %v2358_v23 = vpack.c.bf16 %v1676_v19, %v1675_v18 }
 0x6f6   :  { %v1467_v45 = vadd.f32 %v1392_v40, %v207_v32  ;;  %v1469_v3 = vadd.f32 %v1463_v41, %v209_v2  ;;  %v127_v27 = vpop.permute.xlu1 %126 }
 0x6f7   :  { %v1470_v53 = vmul.f32 0.5, %v1466_v36  ;;  %v178_v28 = vmul.f32 %v2746_v63, %v127_v27  ;;  %v179_v32 = vmul.f32 %v2748_v4, %v127_v27  ;;  %v180_v36 = vmul.f32 %v2753_v12, %v127_v27 }
 0x6f8   :  { %v1474_v58 = vmul.f32 0.5, %v1467_v45  ;;  %v1479_v8 = vmul.f32 0.5, %v1469_v3  ;;  %v181_v2 = vmul.f32 %v2761_v24, %v127_v27 }
 0x6f9   :  { %2433 = vtanh.f32 %v1470_v53  ;;  %v210_v40 = vadd.f32 %v178_v28, %v2755_v13  ;;  %v211_v52 = vadd.f32 %v179_v32, %v2758_v16  ;;  %v212_v3 = vadd.f32 %v180_v36, %v2764_v26 }
 0x6fa   :  { %2435 = vtanh.f32 %v1474_v58  ;;  %v213_v12 = vadd.f32 %v181_v2, %v2769_v44 }
 0x6fb   :  { %2437 = vtanh.f32 %v1468_v1 }
 0x6fc   :  { %2439 = vtanh.f32 %v1479_v8 }
 0x703   :  { %v2434_v17 = vpop.eup %2433 }
 0x704   :  { %v2436_v21 = vpop.eup %2435  ;;  %v1472_v22 = vmul.f32 0.5, %v2434_v17 }
 0x705   :  { %v1476_v29 = vmul.f32 0.5, %v2436_v21  ;;  %v2438_v39 = vpop.eup %2437 }
 0x706   :  { %v1473_v38 = vadd.f32 0.5, %v1472_v22  ;;  %v2440_v60 = vpop.eup %2439 }
 0x707   :  { %v1477_v42 = vadd.f32 0.5, %v1476_v29  ;;  %v1481_v33 = vmul.f32 0.5, %v2440_v60 }
 0x708   :  { %v1484_v46 = vmul.f32 %v2438_v39, %v1473_v38 }
 0x709   :  { %v1483_v50 = vmul.f32 %v1477_v42, %v3015_v11  ;;  %v1482_v5 = vadd.f32 0.5, %v1481_v33  ;;  %v1670_v11 = vld [vmem:[#allocation8 + $0x48] sm:$0xff] }
 0x70a   :  { %v2349_v31 = vpack.c.bf16 %v1670_v11, %v1669_v7 }
 0x70b   :  { %v3059_v51 = vadd.f32 %v1484_v46, %v1483_v50 }
 0x70d   :  { %2441 = vtanh.f32 %v3059_v51 }
 0x717   :  { %v2442_v9 = vpop.eup %2441 }
 0x718   :  { %v1487_v48 = vmul.f32 %v2442_v9, %v1482_v5  ;;  %v1771_v5 = vld [vmem:[%s3092_s5] ss:$0 sm:$0xff] }
 0x71a   :  { %1557 = vmatmul.mubr.f32.vlgmr.msra.gmra.mrb[14].mxu0 %v1487_v48  ;;  %1628 = vmatmul.mubr.f32.vlgmr.msra.gmra.mrb[14].mxu1 %v1487_v48 }
 0x71b   :  { %2338 = vmatpush3.bf16.msra.mxu0 %v2337_v47  ;;  %1821 = vmatprep.mubr.msk.f32.mxu0 %vm2534_vm0, %v2531_v0 }
 0x71c   :  { %2339 = vmatprep.subr.bf16.mxu0 %v2533_v55 }
 0x71f   :  { %2341 = vmatpush3.bf16.msra.mxu0 %v2340_v25 }
 0x720   :  { %2342 = vmatprep.subr.bf16.mxu0 %v2533_v55 }
 0x723   :  { %2344 = vmatpush3.bf16.msra.mxu0 %v2343_v20 }
 0x724   :  { %2345 = vmatprep.subr.bf16.mxu0 %v2533_v55 }
 0x727   :  { %2347 = vmatpush3.bf16.msra.mxu0 %v2346_v6 }
 0x728   :  { %2348 = vmatprep.subr.bf16.mxu0 %v2533_v55 }
 0x72b   :  { %2350 = vmatpush3.bf16.msra.mxu0 %v2349_v31 }
 0x72c   :  { %2351 = vmatprep.subr.bf16.mxu0 %v2533_v55 }
 0x72f   :  { %2353 = vmatpush3.bf16.msra.mxu0 %v2352_v37 }
 0x730   :  { %2354 = vmatprep.subr.bf16.mxu0 %v2533_v55 }
 0x733   :  { %2356 = vmatpush3.bf16.msra.mxu0 %v2355_v14 }
 0x734   :  { %2357 = vmatprep.subr.bf16.mxu0 %v2533_v55 }
 0x737   :  { %2359 = vmatpush3.bf16.msra.mxu0 %v2358_v23 }
 0x7ed   :  { %v1558_v41 = vpop.f32.mrb[14].mxu0  ;;  %v1629_v45 = vpop.f32.mrb[14].mxu1 }
 0x7ee   :  { %v1634_v53 = vadd.f32 %v1558_v41, %v210_v40  ;;  %v1560_v54 = vpop.f32.mrb[15].mxu0  ;;  %v1631_v58 = vpop.f32.mrb[15].mxu1  ;;  %v1636_v4 = vadd.f32 %v1629_v45, %v212_v3 }
 0x7ef   :  { %v1635_v1 = vadd.f32 %v1560_v54, %v211_v52  ;;  %v1637_v13 = vadd.f32 %v1631_v58, %v213_v12 }
 0x7f0   :  { %v1638_v0 = vmul.f32 0.5, %v1634_v53 }
 0x7f1   :  { %v1642_v63 = vmul.f32 0.5, %v1635_v1  ;;  %v1647_v8 = vmul.f32 0.5, %v1637_v13 }
 0x7f2   :  { %2443 = vtanh.f32 %v1638_v0 }
 0x7f3   :  { %2445 = vtanh.f32 %v1642_v63 }
 0x7f4   :  { %2447 = vtanh.f32 %v1636_v4 }
 0x7f5   :  { %2449 = vtanh.f32 %v1647_v8 }
 0x7fc   :  { %v2444_v17 = vpop.eup %2443 }
 0x7fd   :  { %v2446_v16 = vpop.eup %2445  ;;  %v1640_v21 = vmul.f32 0.5, %v2444_v17 }
 0x7fe   :  { %v1644_v22 = vmul.f32 0.5, %v2446_v16  ;;  %v2448_v38 = vpop.eup %2447 }
 0x7ff   :  { %v1641_v29 = vadd.f32 0.5, %v1640_v21  ;;  %v2450_v46 = vpop.eup %2449 }
 0x800   :  { %v1645_v24 = vadd.f32 0.5, %v1644_v22  ;;  %v1649_v50 = vmul.f32 0.5, %v2450_v46 }
 0x801   :  { %v1652_v39 = vmul.f32 %v2448_v38, %v1641_v29 }
 0x802   :  { %v1651_v26 = vmul.f32 %v1645_v24, %v3059_v51  ;;  %v1650_v60 = vadd.f32 0.5, %v1649_v50 }
 0x804   :  { %v1653_v42 = vadd.f32 %v1652_v39, %v1651_v26 }
 0x806   :  { %2451 = vtanh.f32 %v1653_v42 }
 0x810   :  { %v2452_v44 = vpop.eup %2451 }
 0x811   :  { %v1655_v33 = vmul.f32 %v2452_v44, %v1650_v60 }
 0x813   :  { %1822 = vmatmul.mubr.f32.vlgmr.msra.gmra.mrb[16].mxu0 %v1655_v33 }
 0x8e6   :  { %v1750_v9 = vpop.f32.mrb[16].mxu0 }
 0x8e7   :  { %v1751_v48 = vadd.f32 %v1771_v5, %v1750_v9  ;;  %v1823_v49 = vpop.f32.mrb[17].mxu0 }
 0x8e9   :  { %1754 = vst [vmem:[#allocation10] sm:$0xff] %v1751_v48 }
 0x8ea   :  { %2508 = shalt.err (!%p2505_p6)
}
 0x8eb   :  { %s2509_s22 = scalar_lea.hbm %s3093_s6, 128 }
 0x8ec   :  { %p2510_p7 = scmp.ne.s32.totalorder %s3093_s6, %s2509_s22  ;;  %p2513_p8 = scmp.lt.u32.totalorder %s2509_s22, %s3093_s6 }
 0x8ee   :  { %p2515_p9 = pnand %p2513_p8, %p2510_p7 }
 0x8f0   :  { %2518 = shalt.err (!%p2515_p9)
}
 0x8f1   :  { %1764 = dma.vmem_to_hbm [thread:$0]  %s1762_s19, 128, %s3093_s6, [#allocation7]  }
 0x8f2   :  { %2523 = dma.done.wait [#allocation7], 128  }
 0x8f3   :  { %2524 = vsyncadd [#allocation7], 4294967168 }
 0x8f4   :  { %1768 = vsyncpa [#allocation6], 1 }
 0x8f5   :  { %1769 = vsyncpa [#allocation9], 1 }
 0x8f6   :  { %1770 = vsyncpa [#allocation7], 1 }

</bundles_post_ra>
